<compile_context>
chip_gen: v7x
topology: tpu7x:2x2x1
jax: 0.10.0
libtpu: 0.0.40
codegen_flags: <defaults>
</compile_context>

<pallas_src>
import functools

import jax
import jax.numpy as jnp
from jax.experimental import pallas as pl
from jax.experimental.pallas import tpu as pltpu


def _make_fused_lstm_kernel(T: int, B: int, n_layers: int):
    """Builds a fused, wavefront-interleaved multi-layer LSTM kernel."""

    def lstm_cell(gates, c):
        # PyTorch nn.LSTM gate order: i, f, g, o.
        H = c.shape[1]
        sg = jax.nn.sigmoid(gates)                 # one EUP pass, full 4H lanes
        g_g = jnp.tanh(gates[:, 2 * H:3 * H])      # tanh only on the g slice
        i_g = sg[:, 0 * H:1 * H]
        f_g = sg[:, 1 * H:2 * H]
        o_g = sg[:, 3 * H:4 * H]
        c_new = f_g * c + i_g * g_g
        h_new = o_g * jnp.tanh(c_new)
        return h_new, c_new

    def kernel(x_ref, w_ih0_ref, w_hh0_ref, b0_ref, *rest):
        # rest = (w_stk_1, b_1, ..., w_stk_{L-1}, b_{L-1}, y_ref)
        y_ref = rest[-1]                           # (B, T*H_last), lane dense
        stk = rest[:-1]

        w_ih0 = w_ih0_ref[...]                     # (D,  4*H0)
        w_hh0 = w_hh0_ref[...]                     # (H0, 4*H0)
        b0 = b0_ref[...].astype(jnp.float32)       # (1,  4*H0)
        H0 = w_hh0.shape[0]

        # Hoist all weight loads out of the unrolled loop.
        w_stks = [stk[2 * i][...] for i in range(n_layers - 1)]   # (H_{l-1}+H_l, 4*H_l)
        b_stks = [stk[2 * i + 1][...].astype(jnp.float32)
                  for i in range(n_layers - 1)]
        Hs = [H0] + [w.shape[1] // 4 for w in w_stks]

        # Hoisted, time-parallel layer-0 input projection (+ bias): one matmul
        # for the whole sequence, off the serial critical path.
        gx0 = jnp.dot(x_ref[...].astype(w_ih0.dtype), w_ih0,
                      preferred_element_type=jnp.float32) + b0    # (T*B, 4*H0)

        # hidden_states=None in the PyTorch module -> zero initial (h, c).
        hs = [jnp.zeros((B, H), jnp.float32) for H in Hs]
        cs = [jnp.zeros((B, H), jnp.float32) for H in Hs]
        ys = []

        # Wavefront: step s runs layer l at time t = s - l.  Layers are
        # processed in REVERSE order so layer l reads h[l-1] from the previous
        # wavefront step (i.e. layer l-1's output at time s - l), before it is
        # overwritten this step.  All matmuls within a wavefront step are
        # mutually independent -> MXU/EUP latency hiding.
        for s in range(T + n_layers - 1):
            for l in reversed(range(n_layers)):
                t = s - l
                if not (0 <= t < T):
                    continue
                if l == 0:
                    gates = gx0[t * B:(t + 1) * B, :] + jnp.dot(
                        hs[0].astype(w_hh0.dtype), w_hh0,
                        preferred_element_type=jnp.float32)        # (B, 4*H0)
                else:
                    # Folded input projection: [h_{l-1,t} ; h_{l,t-1}] against
                    # the pre-stacked [W_ih_l ; W_hh_l] weight.
                    lhs = jnp.concatenate([hs[l - 1], hs[l]], axis=1)
                    gates = jnp.dot(lhs.astype(w_stks[l - 1].dtype),
                                    w_stks[l - 1],
                                    preferred_element_type=jnp.float32)
                    gates = gates + b_stks[l - 1]                   # (B, 4*H_l)
                hs[l], cs[l] = lstm_cell(gates, cs[l])
                if l == n_layers - 1:
                    ys.append(hs[l])
            # dropout=0.0 -> Identity between layers.

        # Single lane-dense writeback: (B, T*H_last).
        y_ref[...] = jnp.concatenate(ys, axis=1).astype(y_ref.dtype)

    return kernel


def _fused_lstm_pallas(x, params):
    """Run the fused multi-layer LSTM over a (T, B, D) sequence -> (T, B, H)."""
    T, B, D = x.shape
    n_layers = len(params)
    hidden_dims = [int(p["w_hh_t"].shape[0]) for p in params]
    h_last = hidden_dims[-1]

    # Pad the batch up to a multiple of 8 f32 sublanes: fills the vregs and
    # makes every row slice tile aligned. Padded rows are discarded below.
    b_pad = ((B + 7) // 8) * 8
    if b_pad != B:
        x = jnp.pad(x, ((0, 0), (0, b_pad - B), (0, 0)))

    flat_args = [x.reshape(T * b_pad, D)]
    p0 = params[0]
    flat_args += [p0["w_ih_t"], p0["w_hh_t"], p0["bias"]]
    for p in params[1:]:
        # Pre-stack [W_ih ; W_hh] -> (H_prev + H, 4H) so the kernel does one
        # matmul per layer per wavefront step.
        w_stk = jnp.concatenate([p["w_ih_t"], p["w_hh_t"]], axis=0)
        flat_args += [w_stk, p["bias"]]

    out_flat = pl.pallas_call(
        _make_fused_lstm_kernel(T, b_pad, n_layers),
        out_shape=jax.ShapeDtypeStruct((b_pad, T * h_last), x.dtype),
        in_specs=[pl.BlockSpec(memory_space=pltpu.MemorySpace.VMEM)]
        * len(flat_args),
        out_specs=pl.BlockSpec(memory_space=pltpu.MemorySpace.VMEM),
    )(*flat_args)

    out = out_flat.reshape(b_pad, T, h_last).transpose(1, 0, 2)   # (T, b_pad, H)
    return out[:, :B, :]


def init_rnn_params(key, input_dim, hidden_dims, param_dtype=jnp.bfloat16):
    """Deterministic init mirroring torch.nn.LSTM's uniform(-1/sqrt(H), 1/sqrt(H)).

    Returns per-layer dicts with transposed weights:
      w_ih_t: (D_in, 4H), w_hh_t: (H, 4H), bias: (1, 4H) = b_ih + b_hh (f32).
    param_dtype defaults to bfloat16: all TPU generations have bf16-native
    MXUs and f32 operands force multi-pass matmuls on the per-step
    critical-path matmul (this is a latency choice, not a VMEM-fit one).
    Accumulation, gates and the h/c state stay in float32.
    """
    dims = [input_dim] + list(hidden_dims)
    params = []
    for d_in, h in zip(dims[:-1], dims[1:]):
        key, k1, k2, k3, k4 = jax.random.split(key, 5)
        bound = 1.0 / jnp.sqrt(float(h))
        w_ih = jax.random.uniform(k1, (4 * h, d_in), jnp.float32, -bound, bound)
        w_hh = jax.random.uniform(k2, (4 * h, h), jnp.float32, -bound, bound)
        b_ih = jax.random.uniform(k3, (4 * h,), jnp.float32, -bound, bound)
        b_hh = jax.random.uniform(k4, (4 * h,), jnp.float32, -bound, bound)
        params.append({
            "w_ih_t": w_ih.T.astype(param_dtype),      # (D_in, 4H)
            "w_hh_t": w_hh.T.astype(param_dtype),      # (H,   4H)
            "bias": (b_ih + b_hh)[None, :],             # (1,   4H), f32
        })
    return params


@functools.partial(jax.jit, static_argnames=("model",))
def rnn_forward(x, params, model="s2s"):
    """Forward pass of RNN(layer_type='lstm', model=model, ...), x: (T,B,D)."""
    layer_output = _fused_lstm_pallas(x, params)      # (T, B, H)
    if model in ("s2s", "s2as"):
        output = layer_output
    elif model == "s2fh":
        output = layer_output[-1]
    elif model == "s2mh":
        output = jnp.mean(layer_output, axis=0)
    else:
        raise NotImplementedError(model)
    return output


# ---------------- pure-JAX reference (lax.scan) for correctness check --------


def _lstm_layer_ref(x, w_ih_t, w_hh_t, bias):
    T, B, _ = x.shape
    H = w_hh_t.shape[0]
    wdt = w_ih_t.dtype                      # mirror the kernel's operand dtype
    w_ih_f = w_ih_t.astype(jnp.float32)
    w_hh_f = w_hh_t.astype(jnp.float32)
    b_f = bias.astype(jnp.float32)

    def step(carry, x_t):
        h, c = carry
        gates = (x_t.astype(wdt).astype(jnp.float32) @ w_ih_f
                 + h.astype(wdt).astype(jnp.float32) @ w_hh_f + b_f)
        i_g = jax.nn.sigmoid(gates[:, 0 * H:1 * H])
        f_g = jax.nn.sigmoid(gates[:, 1 * H:2 * H])
        g_g = jnp.tanh(gates[:, 2 * H:3 * H])
        o_g = jax.nn.sigmoid(gates[:, 3 * H:4 * H])
        c = f_g * c + i_g * g_g
        h = o_g * jnp.tanh(c)
        return (h, c), h

    init = (jnp.zeros((B, H), jnp.float32), jnp.zeros((B, H), jnp.float32))
    _, ys = jax.lax.scan(step, init, x)
    return ys.astype(x.dtype)


def rnn_forward_ref(x, params, model="s2s"):
    out = x
    for p in params:
        out = _lstm_layer_ref(out, p["w_ih_t"], p["w_hh_t"], p["bias"])
    if model in ("s2s", "s2as"):
        return out
    if model == "s2fh":
        return out[-1]
    if model == "s2mh":
        return jnp.mean(out, axis=0)
    raise NotImplementedError(model)


if __name__ == "__main__":
    T, B, D, H = 8, 2, 4, 32
    n_layers = 2

    key = jax.random.PRNGKey(0)
    k_x, k_p = jax.random.split(key)
    x = jax.random.normal(k_x, (T, B, D), dtype=jnp.float32)  # (T, B, D) time-major
    params = init_rnn_params(k_p, D, [H] * n_layers)

    out = rnn_forward(x, params, model="s2s")
    out = jax.block_until_ready(out)
    assert out.shape == (T, B, H), out.shape
    assert bool(jnp.all(jnp.isfinite(out)))

    ref = jax.block_until_ready(rnn_forward_ref(x, params, model="s2s"))
    max_err = float(jnp.max(jnp.abs(out - ref)))
    assert bool(jnp.allclose(out, ref, rtol=1e-3, atol=1e-3)), max_err

    print("KERNEL_OK")
</pallas_src>

<mosaic_0001>
module attributes {stable_mosaic.version = 11 : i64} {
  func.func @kernel(%arg0: memref<64x4xf32, #tpu.memory_space<vmem>>, %arg1: memref<4x128xbf16, #tpu.memory_space<vmem>>, %arg2: memref<32x128xbf16, #tpu.memory_space<vmem>>, %arg3: memref<1x128xf32, #tpu.memory_space<vmem>>, %arg4: memref<64x128xbf16, #tpu.memory_space<vmem>>, %arg5: memref<1x128xf32, #tpu.memory_space<vmem>>, %arg6: memref<8x256xf32, #tpu.memory_space<vmem>>) attributes {dimension_semantics = [], scalar_prefetch = 0 : i64, scratch_operands = 0 : i64, tpu.core_type = #tpu.core_type<tc>} {
    %c0 = arith.constant 0 : index
    %c0_0 = arith.constant 0 : index
    %0 = vector.load %arg1[%c0, %c0_0] : memref<4x128xbf16, #tpu.memory_space<vmem>>, vector<4x128xbf16>
    %c0_1 = arith.constant 0 : index
    %c0_2 = arith.constant 0 : index
    %1 = vector.load %arg2[%c0_1, %c0_2] : memref<32x128xbf16, #tpu.memory_space<vmem>>, vector<32x128xbf16>
    %c0_3 = arith.constant 0 : index
    %c0_4 = arith.constant 0 : index
    %2 = vector.load %arg3[%c0_3, %c0_4] : memref<1x128xf32, #tpu.memory_space<vmem>>, vector<1x128xf32>
    %c0_5 = arith.constant 0 : index
    %c0_6 = arith.constant 0 : index
    %3 = vector.load %arg4[%c0_5, %c0_6] : memref<64x128xbf16, #tpu.memory_space<vmem>>, vector<64x128xbf16>
    %c0_7 = arith.constant 0 : index
    %c0_8 = arith.constant 0 : index
    %4 = vector.load %arg5[%c0_7, %c0_8] : memref<1x128xf32, #tpu.memory_space<vmem>>, vector<1x128xf32>
    %c0_9 = arith.constant 0 : index
    %c0_10 = arith.constant 0 : index
    %5 = vector.load %arg0[%c0_9, %c0_10] : memref<64x4xf32, #tpu.memory_space<vmem>>, vector<64x4xf32>
    %6 = arith.truncf %5 : vector<64x4xf32> to vector<64x4xbf16>
    %cst = arith.constant dense<0.000000e+00> : vector<64x128xf32>
    %7 = tpu.matmul %6, %0, %cst {dimension_numbers = #tpu.dot_dimension_numbers<[1], [0], [0], [1], [0, 0, 1, 1], [], []>} : vector<64x4xbf16>, vector<4x128xbf16>, vector<64x128xf32> -> vector<64x128xf32>
    %8 = vector.broadcast %2 : vector<1x128xf32> to vector<64x128xf32>
    %9 = arith.addf %7, %8 : vector<64x128xf32>
    %cst_11 = arith.constant 0.000000e+00 : f32
    %10 = vector.broadcast %cst_11 : f32 to vector<8x32xf32>
    %cst_12 = arith.constant 0.000000e+00 : f32
    %11 = vector.broadcast %cst_12 : f32 to vector<8x32xf32>
    %cst_13 = arith.constant 0.000000e+00 : f32
    %12 = vector.broadcast %cst_13 : f32 to vector<8x32xf32>
    %cst_14 = arith.constant 0.000000e+00 : f32
    %13 = vector.broadcast %cst_14 : f32 to vector<8x32xf32>
    %14 = vector.extract_strided_slice %9 {offsets = [0, 0], sizes = [8, 128], strides = [1, 1]} : vector<64x128xf32> to vector<8x128xf32>
    %15 = arith.truncf %10 : vector<8x32xf32> to vector<8x32xbf16>
    %cst_15 = arith.constant dense<0.000000e+00> : vector<8x128xf32>
    %16 = tpu.matmul %15, %1, %cst_15 {dimension_numbers = #tpu.dot_dimension_numbers<[1], [0], [0], [1], [0, 0, 1, 1], [], []>} : vector<8x32xbf16>, vector<32x128xbf16>, vector<8x128xf32> -> vector<8x128xf32>
    %17 = arith.addf %14, %16 : vector<8x128xf32>
    %18 = arith.negf %17 : vector<8x128xf32>
    %19 = math.exp %18 : vector<8x128xf32>
    %cst_16 = arith.constant 1.000000e+00 : f32
    %20 = vector.broadcast %cst_16 : f32 to vector<8x128xf32>
    %21 = arith.addf %20, %19 : vector<8x128xf32>
    %22 = arith.divf %20, %21 : vector<8x128xf32>
    %23 = vector.extract_strided_slice %17 {offsets = [0, 64], sizes = [8, 32], strides = [1, 1]} : vector<8x128xf32> to vector<8x32xf32>
    %24 = math.tanh %23 : vector<8x32xf32>
    %25 = vector.extract_strided_slice %22 {offsets = [0, 0], sizes = [8, 32], strides = [1, 1]} : vector<8x128xf32> to vector<8x32xf32>
    %26 = vector.extract_strided_slice %22 {offsets = [0, 32], sizes = [8, 32], strides = [1, 1]} : vector<8x128xf32> to vector<8x32xf32>
    %27 = vector.extract_strided_slice %22 {offsets = [0, 96], sizes = [8, 32], strides = [1, 1]} : vector<8x128xf32> to vector<8x32xf32>
    %28 = arith.mulf %26, %12 : vector<8x32xf32>
    %29 = arith.mulf %25, %24 : vector<8x32xf32>
    %30 = arith.addf %28, %29 : vector<8x32xf32>
    %31 = math.tanh %30 : vector<8x32xf32>
    %32 = arith.mulf %27, %31 : vector<8x32xf32>
    %33 = tpu.concatenate %32, %11 in 1 : vector<8x32xf32>, vector<8x32xf32> -> vector<8x64xf32>
    %34 = arith.truncf %33 : vector<8x64xf32> to vector<8x64xbf16>
    %cst_17 = arith.constant dense<0.000000e+00> : vector<8x128xf32>
    %35 = tpu.matmul %34, %3, %cst_17 {dimension_numbers = #tpu.dot_dimension_numbers<[1], [0], [0], [1], [0, 0, 1, 1], [], []>} : vector<8x64xbf16>, vector<64x128xbf16>, vector<8x128xf32> -> vector<8x128xf32>
    %36 = vector.broadcast %4 : vector<1x128xf32> to vector<8x128xf32>
    %37 = arith.addf %35, %36 : vector<8x128xf32>
    %38 = arith.negf %37 : vector<8x128xf32>
    %39 = math.exp %38 : vector<8x128xf32>
    %cst_18 = arith.constant 1.000000e+00 : f32
    %40 = vector.broadcast %cst_18 : f32 to vector<8x128xf32>
    %41 = arith.addf %40, %39 : vector<8x128xf32>
    %42 = arith.divf %40, %41 : vector<8x128xf32>
    %43 = vector.extract_strided_slice %37 {offsets = [0, 64], sizes = [8, 32], strides = [1, 1]} : vector<8x128xf32> to vector<8x32xf32>
    %44 = math.tanh %43 : vector<8x32xf32>
    %45 = vector.extract_strided_slice %42 {offsets = [0, 0], sizes = [8, 32], strides = [1, 1]} : vector<8x128xf32> to vector<8x32xf32>
    %46 = vector.extract_strided_slice %42 {offsets = [0, 32], sizes = [8, 32], strides = [1, 1]} : vector<8x128xf32> to vector<8x32xf32>
    %47 = vector.extract_strided_slice %42 {offsets = [0, 96], sizes = [8, 32], strides = [1, 1]} : vector<8x128xf32> to vector<8x32xf32>
    %48 = arith.mulf %46, %13 : vector<8x32xf32>
    %49 = arith.mulf %45, %44 : vector<8x32xf32>
    %50 = arith.addf %48, %49 : vector<8x32xf32>
    %51 = math.tanh %50 : vector<8x32xf32>
    %52 = arith.mulf %47, %51 : vector<8x32xf32>
    %53 = vector.extract_strided_slice %9 {offsets = [8, 0], sizes = [8, 128], strides = [1, 1]} : vector<64x128xf32> to vector<8x128xf32>
    %54 = arith.truncf %32 : vector<8x32xf32> to vector<8x32xbf16>
    %cst_19 = arith.constant dense<0.000000e+00> : vector<8x128xf32>
    %55 = tpu.matmul %54, %1, %cst_19 {dimension_numbers = #tpu.dot_dimension_numbers<[1], [0], [0], [1], [0, 0, 1, 1], [], []>} : vector<8x32xbf16>, vector<32x128xbf16>, vector<8x128xf32> -> vector<8x128xf32>
    %56 = arith.addf %53, %55 : vector<8x128xf32>
    %57 = arith.negf %56 : vector<8x128xf32>
    %58 = math.exp %57 : vector<8x128xf32>
    %cst_20 = arith.constant 1.000000e+00 : f32
    %59 = vector.broadcast %cst_20 : f32 to vector<8x128xf32>
    %60 = arith.addf %59, %58 : vector<8x128xf32>
    %61 = arith.divf %59, %60 : vector<8x128xf32>
    %62 = vector.extract_strided_slice %56 {offsets = [0, 64], sizes = [8, 32], strides = [1, 1]} : vector<8x128xf32> to vector<8x32xf32>
    %63 = math.tanh %62 : vector<8x32xf32>
    %64 = vector.extract_strided_slice %61 {offsets = [0, 0], sizes = [8, 32], strides = [1, 1]} : vector<8x128xf32> to vector<8x32xf32>
    %65 = vector.extract_strided_slice %61 {offsets = [0, 32], sizes = [8, 32], strides = [1, 1]} : vector<8x128xf32> to vector<8x32xf32>
    %66 = vector.extract_strided_slice %61 {offsets = [0, 96], sizes = [8, 32], strides = [1, 1]} : vector<8x128xf32> to vector<8x32xf32>
    %67 = arith.mulf %65, %30 : vector<8x32xf32>
    %68 = arith.mulf %64, %63 : vector<8x32xf32>
    %69 = arith.addf %67, %68 : vector<8x32xf32>
    %70 = math.tanh %69 : vector<8x32xf32>
    %71 = arith.mulf %66, %70 : vector<8x32xf32>
    %72 = tpu.concatenate %71, %52 in 1 : vector<8x32xf32>, vector<8x32xf32> -> vector<8x64xf32>
    %73 = arith.truncf %72 : vector<8x64xf32> to vector<8x64xbf16>
    %cst_21 = arith.constant dense<0.000000e+00> : vector<8x128xf32>
    %74 = tpu.matmul %73, %3, %cst_21 {dimension_numbers = #tpu.dot_dimension_numbers<[1], [0], [0], [1], [0, 0, 1, 1], [], []>} : vector<8x64xbf16>, vector<64x128xbf16>, vector<8x128xf32> -> vector<8x128xf32>
    %75 = vector.broadcast %4 : vector<1x128xf32> to vector<8x128xf32>
    %76 = arith.addf %74, %75 : vector<8x128xf32>
    %77 = arith.negf %76 : vector<8x128xf32>
    %78 = math.exp %77 : vector<8x128xf32>
    %cst_22 = arith.constant 1.000000e+00 : f32
    %79 = vector.broadcast %cst_22 : f32 to vector<8x128xf32>
    %80 = arith.addf %79, %78 : vector<8x128xf32>
    %81 = arith.divf %79, %80 : vector<8x128xf32>
    %82 = vector.extract_strided_slice %76 {offsets = [0, 64], sizes = [8, 32], strides = [1, 1]} : vector<8x128xf32> to vector<8x32xf32>
    %83 = math.tanh %82 : vector<8x32xf32>
    %84 = vector.extract_strided_slice %81 {offsets = [0, 0], sizes = [8, 32], strides = [1, 1]} : vector<8x128xf32> to vector<8x32xf32>
    %85 = vector.extract_strided_slice %81 {offsets = [0, 32], sizes = [8, 32], strides = [1, 1]} : vector<8x128xf32> to vector<8x32xf32>
    %86 = vector.extract_strided_slice %81 {offsets = [0, 96], sizes = [8, 32], strides = [1, 1]} : vector<8x128xf32> to vector<8x32xf32>
    %87 = arith.mulf %85, %50 : vector<8x32xf32>
    %88 = arith.mulf %84, %83 : vector<8x32xf32>
    %89 = arith.addf %87, %88 : vector<8x32xf32>
    %90 = math.tanh %89 : vector<8x32xf32>
    %91 = arith.mulf %86, %90 : vector<8x32xf32>
    %92 = vector.extract_strided_slice %9 {offsets = [16, 0], sizes = [8, 128], strides = [1, 1]} : vector<64x128xf32> to vector<8x128xf32>
    %93 = arith.truncf %71 : vector<8x32xf32> to vector<8x32xbf16>
    %cst_23 = arith.constant dense<0.000000e+00> : vector<8x128xf32>
    %94 = tpu.matmul %93, %1, %cst_23 {dimension_numbers = #tpu.dot_dimension_numbers<[1], [0], [0], [1], [0, 0, 1, 1], [], []>} : vector<8x32xbf16>, vector<32x128xbf16>, vector<8x128xf32> -> vector<8x128xf32>
    %95 = arith.addf %92, %94 : vector<8x128xf32>
    %96 = arith.negf %95 : vector<8x128xf32>
    %97 = math.exp %96 : vector<8x128xf32>
    %cst_24 = arith.constant 1.000000e+00 : f32
    %98 = vector.broadcast %cst_24 : f32 to vector<8x128xf32>
    %99 = arith.addf %98, %97 : vector<8x128xf32>
    %100 = arith.divf %98, %99 : vector<8x128xf32>
    %101 = vector.extract_strided_slice %95 {offsets = [0, 64], sizes = [8, 32], strides = [1, 1]} : vector<8x128xf32> to vector<8x32xf32>
    %102 = math.tanh %101 : vector<8x32xf32>
    %103 = vector.extract_strided_slice %100 {offsets = [0, 0], sizes = [8, 32], strides = [1, 1]} : vector<8x128xf32> to vector<8x32xf32>
    %104 = vector.extract_strided_slice %100 {offsets = [0, 32], sizes = [8, 32], strides = [1, 1]} : vector<8x128xf32> to vector<8x32xf32>
    %105 = vector.extract_strided_slice %100 {offsets = [0, 96], sizes = [8, 32], strides = [1, 1]} : vector<8x128xf32> to vector<8x32xf32>
    %106 = arith.mulf %104, %69 : vector<8x32xf32>
    %107 = arith.mulf %103, %102 : vector<8x32xf32>
    %108 = arith.addf %106, %107 : vector<8x32xf32>
    %109 = math.tanh %108 : vector<8x32xf32>
    %110 = arith.mulf %105, %109 : vector<8x32xf32>
    %111 = tpu.concatenate %110, %91 in 1 : vector<8x32xf32>, vector<8x32xf32> -> vector<8x64xf32>
    %112 = arith.truncf %111 : vector<8x64xf32> to vector<8x64xbf16>
    %cst_25 = arith.constant dense<0.000000e+00> : vector<8x128xf32>
    %113 = tpu.matmul %112, %3, %cst_25 {dimension_numbers = #tpu.dot_dimension_numbers<[1], [0], [0], [1], [0, 0, 1, 1], [], []>} : vector<8x64xbf16>, vector<64x128xbf16>, vector<8x128xf32> -> vector<8x128xf32>
    %114 = vector.broadcast %4 : vector<1x128xf32> to vector<8x128xf32>
    %115 = arith.addf %113, %114 : vector<8x128xf32>
    %116 = arith.negf %115 : vector<8x128xf32>
    %117 = math.exp %116 : vector<8x128xf32>
    %cst_26 = arith.constant 1.000000e+00 : f32
    %118 = vector.broadcast %cst_26 : f32 to vector<8x128xf32>
    %119 = arith.addf %118, %117 : vector<8x128xf32>
    %120 = arith.divf %118, %119 : vector<8x128xf32>
    %121 = vector.extract_strided_slice %115 {offsets = [0, 64], sizes = [8, 32], strides = [1, 1]} : vector<8x128xf32> to vector<8x32xf32>
    %122 = math.tanh %121 : vector<8x32xf32>
    %123 = vector.extract_strided_slice %120 {offsets = [0, 0], sizes = [8, 32], strides = [1, 1]} : vector<8x128xf32> to vector<8x32xf32>
    %124 = vector.extract_strided_slice %120 {offsets = [0, 32], sizes = [8, 32], strides = [1, 1]} : vector<8x128xf32> to vector<8x32xf32>
    %125 = vector.extract_strided_slice %120 {offsets = [0, 96], sizes = [8, 32], strides = [1, 1]} : vector<8x128xf32> to vector<8x32xf32>
    %126 = arith.mulf %124, %89 : vector<8x32xf32>
    %127 = arith.mulf %123, %122 : vector<8x32xf32>
    %128 = arith.addf %126, %127 : vector<8x32xf32>
    %129 = math.tanh %128 : vector<8x32xf32>
    %130 = arith.mulf %125, %129 : vector<8x32xf32>
    %131 = vector.extract_strided_slice %9 {offsets = [24, 0], sizes = [8, 128], strides = [1, 1]} : vector<64x128xf32> to vector<8x128xf32>
    %132 = arith.truncf %110 : vector<8x32xf32> to vector<8x32xbf16>
    %cst_27 = arith.constant dense<0.000000e+00> : vector<8x128xf32>
    %133 = tpu.matmul %132, %1, %cst_27 {dimension_numbers = #tpu.dot_dimension_numbers<[1], [0], [0], [1], [0, 0, 1, 1], [], []>} : vector<8x32xbf16>, vector<32x128xbf16>, vector<8x128xf32> -> vector<8x128xf32>
    %134 = arith.addf %131, %133 : vector<8x128xf32>
    %135 = arith.negf %134 : vector<8x128xf32>
    %136 = math.exp %135 : vector<8x128xf32>
    %cst_28 = arith.constant 1.000000e+00 : f32
    %137 = vector.broadcast %cst_28 : f32 to vector<8x128xf32>
    %138 = arith.addf %137, %136 : vector<8x128xf32>
    %139 = arith.divf %137, %138 : vector<8x128xf32>
    %140 = vector.extract_strided_slice %134 {offsets = [0, 64], sizes = [8, 32], strides = [1, 1]} : vector<8x128xf32> to vector<8x32xf32>
    %141 = math.tanh %140 : vector<8x32xf32>
    %142 = vector.extract_strided_slice %139 {offsets = [0, 0], sizes = [8, 32], strides = [1, 1]} : vector<8x128xf32> to vector<8x32xf32>
    %143 = vector.extract_strided_slice %139 {offsets = [0, 32], sizes = [8, 32], strides = [1, 1]} : vector<8x128xf32> to vector<8x32xf32>
    %144 = vector.extract_strided_slice %139 {offsets = [0, 96], sizes = [8, 32], strides = [1, 1]} : vector<8x128xf32> to vector<8x32xf32>
    %145 = arith.mulf %143, %108 : vector<8x32xf32>
    %146 = arith.mulf %142, %141 : vector<8x32xf32>
    %147 = arith.addf %145, %146 : vector<8x32xf32>
    %148 = math.tanh %147 : vector<8x32xf32>
    %149 = arith.mulf %144, %148 : vector<8x32xf32>
    %150 = tpu.concatenate %149, %130 in 1 : vector<8x32xf32>, vector<8x32xf32> -> vector<8x64xf32>
    %151 = arith.truncf %150 : vector<8x64xf32> to vector<8x64xbf16>
    %cst_29 = arith.constant dense<0.000000e+00> : vector<8x128xf32>
    %152 = tpu.matmul %151, %3, %cst_29 {dimension_numbers = #tpu.dot_dimension_numbers<[1], [0], [0], [1], [0, 0, 1, 1], [], []>} : vector<8x64xbf16>, vector<64x128xbf16>, vector<8x128xf32> -> vector<8x128xf32>
    %153 = vector.broadcast %4 : vector<1x128xf32> to vector<8x128xf32>
    %154 = arith.addf %152, %153 : vector<8x128xf32>
    %155 = arith.negf %154 : vector<8x128xf32>
    %156 = math.exp %155 : vector<8x128xf32>
    %cst_30 = arith.constant 1.000000e+00 : f32
    %157 = vector.broadcast %cst_30 : f32 to vector<8x128xf32>
    %158 = arith.addf %157, %156 : vector<8x128xf32>
    %159 = arith.divf %157, %158 : vector<8x128xf32>
    %160 = vector.extract_strided_slice %154 {offsets = [0, 64], sizes = [8, 32], strides = [1, 1]} : vector<8x128xf32> to vector<8x32xf32>
    %161 = math.tanh %160 : vector<8x32xf32>
    %162 = vector.extract_strided_slice %159 {offsets = [0, 0], sizes = [8, 32], strides = [1, 1]} : vector<8x128xf32> to vector<8x32xf32>
    %163 = vector.extract_strided_slice %159 {offsets = [0, 32], sizes = [8, 32], strides = [1, 1]} : vector<8x128xf32> to vector<8x32xf32>
    %164 = vector.extract_strided_slice %159 {offsets = [0, 96], sizes = [8, 32], strides = [1, 1]} : vector<8x128xf32> to vector<8x32xf32>
    %165 = arith.mulf %163, %128 : vector<8x32xf32>
    %166 = arith.mulf %162, %161 : vector<8x32xf32>
    %167 = arith.addf %165, %166 : vector<8x32xf32>
    %168 = math.tanh %167 : vector<8x32xf32>
    %169 = arith.mulf %164, %168 : vector<8x32xf32>
    %170 = vector.extract_strided_slice %9 {offsets = [32, 0], sizes = [8, 128], strides = [1, 1]} : vector<64x128xf32> to vector<8x128xf32>
    %171 = arith.truncf %149 : vector<8x32xf32> to vector<8x32xbf16>
    %cst_31 = arith.constant dense<0.000000e+00> : vector<8x128xf32>
    %172 = tpu.matmul %171, %1, %cst_31 {dimension_numbers = #tpu.dot_dimension_numbers<[1], [0], [0], [1], [0, 0, 1, 1], [], []>} : vector<8x32xbf16>, vector<32x128xbf16>, vector<8x128xf32> -> vector<8x128xf32>
    %173 = arith.addf %170, %172 : vector<8x128xf32>
    %174 = arith.negf %173 : vector<8x128xf32>
    %175 = math.exp %174 : vector<8x128xf32>
    %cst_32 = arith.constant 1.000000e+00 : f32
    %176 = vector.broadcast %cst_32 : f32 to vector<8x128xf32>
    %177 = arith.addf %176, %175 : vector<8x128xf32>
    %178 = arith.divf %176, %177 : vector<8x128xf32>
    %179 = vector.extract_strided_slice %173 {offsets = [0, 64], sizes = [8, 32], strides = [1, 1]} : vector<8x128xf32> to vector<8x32xf32>
    %180 = math.tanh %179 : vector<8x32xf32>
    %181 = vector.extract_strided_slice %178 {offsets = [0, 0], sizes = [8, 32], strides = [1, 1]} : vector<8x128xf32> to vector<8x32xf32>
    %182 = vector.extract_strided_slice %178 {offsets = [0, 32], sizes = [8, 32], strides = [1, 1]} : vector<8x128xf32> to vector<8x32xf32>
    %183 = vector.extract_strided_slice %178 {offsets = [0, 96], sizes = [8, 32], strides = [1, 1]} : vector<8x128xf32> to vector<8x32xf32>
    %184 = arith.mulf %182, %147 : vector<8x32xf32>
    %185 = arith.mulf %181, %180 : vector<8x32xf32>
    %186 = arith.addf %184, %185 : vector<8x32xf32>
    %187 = math.tanh %186 : vector<8x32xf32>
    %188 = arith.mulf %183, %187 : vector<8x32xf32>
    %189 = tpu.concatenate %188, %169 in 1 : vector<8x32xf32>, vector<8x32xf32> -> vector<8x64xf32>
    %190 = arith.truncf %189 : vector<8x64xf32> to vector<8x64xbf16>
    %cst_33 = arith.constant dense<0.000000e+00> : vector<8x128xf32>
    %191 = tpu.matmul %190, %3, %cst_33 {dimension_numbers = #tpu.dot_dimension_numbers<[1], [0], [0], [1], [0, 0, 1, 1], [], []>} : vector<8x64xbf16>, vector<64x128xbf16>, vector<8x128xf32> -> vector<8x128xf32>
    %192 = vector.broadcast %4 : vector<1x128xf32> to vector<8x128xf32>
    %193 = arith.addf %191, %192 : vector<8x128xf32>
    %194 = arith.negf %193 : vector<8x128xf32>
    %195 = math.exp %194 : vector<8x128xf32>
    %cst_34 = arith.constant 1.000000e+00 : f32
    %196 = vector.broadcast %cst_34 : f32 to vector<8x128xf32>
    %197 = arith.addf %196, %195 : vector<8x128xf32>
    %198 = arith.divf %196, %197 : vector<8x128xf32>
    %199 = vector.extract_strided_slice %193 {offsets = [0, 64], sizes = [8, 32], strides = [1, 1]} : vector<8x128xf32> to vector<8x32xf32>
    %200 = math.tanh %199 : vector<8x32xf32>
    %201 = vector.extract_strided_slice %198 {offsets = [0, 0], sizes = [8, 32], strides = [1, 1]} : vector<8x128xf32> to vector<8x32xf32>
    %202 = vector.extract_strided_slice %198 {offsets = [0, 32], sizes = [8, 32], strides = [1, 1]} : vector<8x128xf32> to vector<8x32xf32>
    %203 = vector.extract_strided_slice %198 {offsets = [0, 96], sizes = [8, 32], strides = [1, 1]} : vector<8x128xf32> to vector<8x32xf32>
    %204 = arith.mulf %202, %167 : vector<8x32xf32>
    %205 = arith.mulf %201, %200 : vector<8x32xf32>
    %206 = arith.addf %204, %205 : vector<8x32xf32>
    %207 = math.tanh %206 : vector<8x32xf32>
    %208 = arith.mulf %203, %207 : vector<8x32xf32>
    %209 = vector.extract_strided_slice %9 {offsets = [40, 0], sizes = [8, 128], strides = [1, 1]} : vector<64x128xf32> to vector<8x128xf32>
    %210 = arith.truncf %188 : vector<8x32xf32> to vector<8x32xbf16>
    %cst_35 = arith.constant dense<0.000000e+00> : vector<8x128xf32>
    %211 = tpu.matmul %210, %1, %cst_35 {dimension_numbers = #tpu.dot_dimension_numbers<[1], [0], [0], [1], [0, 0, 1, 1], [], []>} : vector<8x32xbf16>, vector<32x128xbf16>, vector<8x128xf32> -> vector<8x128xf32>
    %212 = arith.addf %209, %211 : vector<8x128xf32>
    %213 = arith.negf %212 : vector<8x128xf32>
    %214 = math.exp %213 : vector<8x128xf32>
    %cst_36 = arith.constant 1.000000e+00 : f32
    %215 = vector.broadcast %cst_36 : f32 to vector<8x128xf32>
    %216 = arith.addf %215, %214 : vector<8x128xf32>
    %217 = arith.divf %215, %216 : vector<8x128xf32>
    %218 = vector.extract_strided_slice %212 {offsets = [0, 64], sizes = [8, 32], strides = [1, 1]} : vector<8x128xf32> to vector<8x32xf32>
    %219 = math.tanh %218 : vector<8x32xf32>
    %220 = vector.extract_strided_slice %217 {offsets = [0, 0], sizes = [8, 32], strides = [1, 1]} : vector<8x128xf32> to vector<8x32xf32>
    %221 = vector.extract_strided_slice %217 {offsets = [0, 32], sizes = [8, 32], strides = [1, 1]} : vector<8x128xf32> to vector<8x32xf32>
    %222 = vector.extract_strided_slice %217 {offsets = [0, 96], sizes = [8, 32], strides = [1, 1]} : vector<8x128xf32> to vector<8x32xf32>
    %223 = arith.mulf %221, %186 : vector<8x32xf32>
    %224 = arith.mulf %220, %219 : vector<8x32xf32>
    %225 = arith.addf %223, %224 : vector<8x32xf32>
    %226 = math.tanh %225 : vector<8x32xf32>
    %227 = arith.mulf %222, %226 : vector<8x32xf32>
    %228 = tpu.concatenate %227, %208 in 1 : vector<8x32xf32>, vector<8x32xf32> -> vector<8x64xf32>
    %229 = arith.truncf %228 : vector<8x64xf32> to vector<8x64xbf16>
    %cst_37 = arith.constant dense<0.000000e+00> : vector<8x128xf32>
    %230 = tpu.matmul %229, %3, %cst_37 {dimension_numbers = #tpu.dot_dimension_numbers<[1], [0], [0], [1], [0, 0, 1, 1], [], []>} : vector<8x64xbf16>, vector<64x128xbf16>, vector<8x128xf32> -> vector<8x128xf32>
    %231 = vector.broadcast %4 : vector<1x128xf32> to vector<8x128xf32>
    %232 = arith.addf %230, %231 : vector<8x128xf32>
    %233 = arith.negf %232 : vector<8x128xf32>
    %234 = math.exp %233 : vector<8x128xf32>
    %cst_38 = arith.constant 1.000000e+00 : f32
    %235 = vector.broadcast %cst_38 : f32 to vector<8x128xf32>
    %236 = arith.addf %235, %234 : vector<8x128xf32>
    %237 = arith.divf %235, %236 : vector<8x128xf32>
    %238 = vector.extract_strided_slice %232 {offsets = [0, 64], sizes = [8, 32], strides = [1, 1]} : vector<8x128xf32> to vector<8x32xf32>
    %239 = math.tanh %238 : vector<8x32xf32>
    %240 = vector.extract_strided_slice %237 {offsets = [0, 0], sizes = [8, 32], strides = [1, 1]} : vector<8x128xf32> to vector<8x32xf32>
    %241 = vector.extract_strided_slice %237 {offsets = [0, 32], sizes = [8, 32], strides = [1, 1]} : vector<8x128xf32> to vector<8x32xf32>
    %242 = vector.extract_strided_slice %237 {offsets = [0, 96], sizes = [8, 32], strides = [1, 1]} : vector<8x128xf32> to vector<8x32xf32>
    %243 = arith.mulf %241, %206 : vector<8x32xf32>
    %244 = arith.mulf %240, %239 : vector<8x32xf32>
    %245 = arith.addf %243, %244 : vector<8x32xf32>
    %246 = math.tanh %245 : vector<8x32xf32>
    %247 = arith.mulf %242, %246 : vector<8x32xf32>
    %248 = vector.extract_strided_slice %9 {offsets = [48, 0], sizes = [8, 128], strides = [1, 1]} : vector<64x128xf32> to vector<8x128xf32>
    %249 = arith.truncf %227 : vector<8x32xf32> to vector<8x32xbf16>
    %cst_39 = arith.constant dense<0.000000e+00> : vector<8x128xf32>
    %250 = tpu.matmul %249, %1, %cst_39 {dimension_numbers = #tpu.dot_dimension_numbers<[1], [0], [0], [1], [0, 0, 1, 1], [], []>} : vector<8x32xbf16>, vector<32x128xbf16>, vector<8x128xf32> -> vector<8x128xf32>
    %251 = arith.addf %248, %250 : vector<8x128xf32>
    %252 = arith.negf %251 : vector<8x128xf32>
    %253 = math.exp %252 : vector<8x128xf32>
    %cst_40 = arith.constant 1.000000e+00 : f32
    %254 = vector.broadcast %cst_40 : f32 to vector<8x128xf32>
    %255 = arith.addf %254, %253 : vector<8x128xf32>
    %256 = arith.divf %254, %255 : vector<8x128xf32>
    %257 = vector.extract_strided_slice %251 {offsets = [0, 64], sizes = [8, 32], strides = [1, 1]} : vector<8x128xf32> to vector<8x32xf32>
    %258 = math.tanh %257 : vector<8x32xf32>
    %259 = vector.extract_strided_slice %256 {offsets = [0, 0], sizes = [8, 32], strides = [1, 1]} : vector<8x128xf32> to vector<8x32xf32>
    %260 = vector.extract_strided_slice %256 {offsets = [0, 32], sizes = [8, 32], strides = [1, 1]} : vector<8x128xf32> to vector<8x32xf32>
    %261 = vector.extract_strided_slice %256 {offsets = [0, 96], sizes = [8, 32], strides = [1, 1]} : vector<8x128xf32> to vector<8x32xf32>
    %262 = arith.mulf %260, %225 : vector<8x32xf32>
    %263 = arith.mulf %259, %258 : vector<8x32xf32>
    %264 = arith.addf %262, %263 : vector<8x32xf32>
    %265 = math.tanh %264 : vector<8x32xf32>
    %266 = arith.mulf %261, %265 : vector<8x32xf32>
    %267 = tpu.concatenate %266, %247 in 1 : vector<8x32xf32>, vector<8x32xf32> -> vector<8x64xf32>
    %268 = arith.truncf %267 : vector<8x64xf32> to vector<8x64xbf16>
    %cst_41 = arith.constant dense<0.000000e+00> : vector<8x128xf32>
    %269 = tpu.matmul %268, %3, %cst_41 {dimension_numbers = #tpu.dot_dimension_numbers<[1], [0], [0], [1], [0, 0, 1, 1], [], []>} : vector<8x64xbf16>, vector<64x128xbf16>, vector<8x128xf32> -> vector<8x128xf32>
    %270 = vector.broadcast %4 : vector<1x128xf32> to vector<8x128xf32>
    %271 = arith.addf %269, %270 : vector<8x128xf32>
    %272 = arith.negf %271 : vector<8x128xf32>
    %273 = math.exp %272 : vector<8x128xf32>
    %cst_42 = arith.constant 1.000000e+00 : f32
    %274 = vector.broadcast %cst_42 : f32 to vector<8x128xf32>
    %275 = arith.addf %274, %273 : vector<8x128xf32>
    %276 = arith.divf %274, %275 : vector<8x128xf32>
    %277 = vector.extract_strided_slice %271 {offsets = [0, 64], sizes = [8, 32], strides = [1, 1]} : vector<8x128xf32> to vector<8x32xf32>
    %278 = math.tanh %277 : vector<8x32xf32>
    %279 = vector.extract_strided_slice %276 {offsets = [0, 0], sizes = [8, 32], strides = [1, 1]} : vector<8x128xf32> to vector<8x32xf32>
    %280 = vector.extract_strided_slice %276 {offsets = [0, 32], sizes = [8, 32], strides = [1, 1]} : vector<8x128xf32> to vector<8x32xf32>
    %281 = vector.extract_strided_slice %276 {offsets = [0, 96], sizes = [8, 32], strides = [1, 1]} : vector<8x128xf32> to vector<8x32xf32>
    %282 = arith.mulf %280, %245 : vector<8x32xf32>
    %283 = arith.mulf %279, %278 : vector<8x32xf32>
    %284 = arith.addf %282, %283 : vector<8x32xf32>
    %285 = math.tanh %284 : vector<8x32xf32>
    %286 = arith.mulf %281, %285 : vector<8x32xf32>
    %287 = vector.extract_strided_slice %9 {offsets = [56, 0], sizes = [8, 128], strides = [1, 1]} : vector<64x128xf32> to vector<8x128xf32>
    %288 = arith.truncf %266 : vector<8x32xf32> to vector<8x32xbf16>
    %cst_43 = arith.constant dense<0.000000e+00> : vector<8x128xf32>
    %289 = tpu.matmul %288, %1, %cst_43 {dimension_numbers = #tpu.dot_dimension_numbers<[1], [0], [0], [1], [0, 0, 1, 1], [], []>} : vector<8x32xbf16>, vector<32x128xbf16>, vector<8x128xf32> -> vector<8x128xf32>
    %290 = arith.addf %287, %289 : vector<8x128xf32>
    %291 = arith.negf %290 : vector<8x128xf32>
    %292 = math.exp %291 : vector<8x128xf32>
    %cst_44 = arith.constant 1.000000e+00 : f32
    %293 = vector.broadcast %cst_44 : f32 to vector<8x128xf32>
    %294 = arith.addf %293, %292 : vector<8x128xf32>
    %295 = arith.divf %293, %294 : vector<8x128xf32>
    %296 = vector.extract_strided_slice %290 {offsets = [0, 64], sizes = [8, 32], strides = [1, 1]} : vector<8x128xf32> to vector<8x32xf32>
    %297 = math.tanh %296 : vector<8x32xf32>
    %298 = vector.extract_strided_slice %295 {offsets = [0, 0], sizes = [8, 32], strides = [1, 1]} : vector<8x128xf32> to vector<8x32xf32>
    %299 = vector.extract_strided_slice %295 {offsets = [0, 32], sizes = [8, 32], strides = [1, 1]} : vector<8x128xf32> to vector<8x32xf32>
    %300 = vector.extract_strided_slice %295 {offsets = [0, 96], sizes = [8, 32], strides = [1, 1]} : vector<8x128xf32> to vector<8x32xf32>
    %301 = arith.mulf %299, %264 : vector<8x32xf32>
    %302 = arith.mulf %298, %297 : vector<8x32xf32>
    %303 = arith.addf %301, %302 : vector<8x32xf32>
    %304 = math.tanh %303 : vector<8x32xf32>
    %305 = arith.mulf %300, %304 : vector<8x32xf32>
    %306 = tpu.concatenate %305, %286 in 1 : vector<8x32xf32>, vector<8x32xf32> -> vector<8x64xf32>
    %307 = arith.truncf %306 : vector<8x64xf32> to vector<8x64xbf16>
    %cst_45 = arith.constant dense<0.000000e+00> : vector<8x128xf32>
    %308 = tpu.matmul %307, %3, %cst_45 {dimension_numbers = #tpu.dot_dimension_numbers<[1], [0], [0], [1], [0, 0, 1, 1], [], []>} : vector<8x64xbf16>, vector<64x128xbf16>, vector<8x128xf32> -> vector<8x128xf32>
    %309 = vector.broadcast %4 : vector<1x128xf32> to vector<8x128xf32>
    %310 = arith.addf %308, %309 : vector<8x128xf32>
    %311 = arith.negf %310 : vector<8x128xf32>
    %312 = math.exp %311 : vector<8x128xf32>
    %cst_46 = arith.constant 1.000000e+00 : f32
    %313 = vector.broadcast %cst_46 : f32 to vector<8x128xf32>
    %314 = arith.addf %313, %312 : vector<8x128xf32>
    %315 = arith.divf %313, %314 : vector<8x128xf32>
    %316 = vector.extract_strided_slice %310 {offsets = [0, 64], sizes = [8, 32], strides = [1, 1]} : vector<8x128xf32> to vector<8x32xf32>
    %317 = math.tanh %316 : vector<8x32xf32>
    %318 = vector.extract_strided_slice %315 {offsets = [0, 0], sizes = [8, 32], strides = [1, 1]} : vector<8x128xf32> to vector<8x32xf32>
    %319 = vector.extract_strided_slice %315 {offsets = [0, 32], sizes = [8, 32], strides = [1, 1]} : vector<8x128xf32> to vector<8x32xf32>
    %320 = vector.extract_strided_slice %315 {offsets = [0, 96], sizes = [8, 32], strides = [1, 1]} : vector<8x128xf32> to vector<8x32xf32>
    %321 = arith.mulf %319, %284 : vector<8x32xf32>
    %322 = arith.mulf %318, %317 : vector<8x32xf32>
    %323 = arith.addf %321, %322 : vector<8x32xf32>
    %324 = math.tanh %323 : vector<8x32xf32>
    %325 = arith.mulf %320, %324 : vector<8x32xf32>
    %326 = tpu.concatenate %52, %91, %130, %169, %208, %247, %286, %325 in 1 : vector<8x32xf32>, vector<8x32xf32>, vector<8x32xf32>, vector<8x32xf32>, vector<8x32xf32>, vector<8x32xf32>, vector<8x32xf32>, vector<8x32xf32> -> vector<8x256xf32>
    %c0_47 = arith.constant 0 : index
    %c0_48 = arith.constant 0 : index
    %327 = vector.load %arg6[%c0_47, %c0_48] : memref<8x256xf32, #tpu.memory_space<vmem>>, vector<8x256xf32>
    tpu.vector_store %arg6[%c0_47, %c0_48], %326 {strides = array<i32>} : memref<8x256xf32, #tpu.memory_space<vmem>>, vector<8x256xf32>,
    return
  }
}

</mosaic_0001>

<bundles_post_ra>
// kernel: rnn_forward.1
= control target key start
LH: loop header
LB: loop body
LE: loop exit
PB: predicated region body
PF: predicated region fallthrough
CT: control target
= control target key end

     0   :  { %vm70_vm0 = vcmask 1041408   ;;  %v1816_v1 = vmov 0.0   ;;  %vm1817_vm1 = vmmov 0   ;;  %vm57_vm2 = vcmask 31744   ;;  %s1819_s11 = smov 64   ;;  %s1820_s12 = smov 32   ;;  %s2278_s1 = inlined_call_operand.vmem [shape: bf16[4,128], index: 1, kind: input, shape index: {}]   ;;  %s2279_s2 = inlined_call_operand.vmem [shape: bf16[32,128], index: 2, kind: input, shape index: {}]   ;;  %s2280_s0 = inlined_call_operand.vmem [shape: f32[64,4], index: 0, kind: input, shape index: {}]   ;;  %s2281_s3 = inlined_call_operand.vmem [shape: f32[1,128], index: 3, kind: input, shape index: {}]   ;;  %s2282_s4 = inlined_call_operand.vmem [shape: bf16[64,128], index: 4, kind: input, shape index: {}]   ;;  %s2283_s5 = inlined_call_operand.vmem [shape: f32[1,128], index: 5, kind: input, shape index: {}]   ;;  %s2284_s6 = inlined_call_operand.vmem [shape: f32[8,256], index: 6, kind: output, shape index: {}]  }
   0x1   :  { %v24_v0 = vld [vmem:[%s2278_s1] sm:$0x3]  ;;  %1514 = vmatprep.subr.bf16.mxu1 %v1816_v1  ;;  %1518 = vmatprep.mubr.msk.bf16.mxu1 %vm1817_vm1, %v1816_v1  ;;  %v40_v5 = vld [vmem:[%s2280_s0 + $0x8] sm:$0xff]  ;;  %v41_v7 = vld [vmem:[%s2280_s0 + $0x10] sm:$0xff]  ;;  %v1818_v11 = vmov 0   ;;  %vm151_vm3 = vcmask 261120  }
   0x2   :  { %1674 = vmatprep.subr.msk.bf16.mxu0 %vm70_vm0, %v24_v0  ;;  %v72_v2 = vsel %vm70_vm0, %v24_v0, 0  ;;  %v1866_v3 = vld [vmem:[%s2279_s2] sm:$0xff]   ;;  %v42_v8 = vld [vmem:[%s2280_s0 + $0x18] sm:$0xff]  ;;  %v1884_v10 = vld [vmem:[%s2279_s2 + $0x8] sm:$0xff]   ;;  %vm256_vm4 = vcmask 523264   ;;  %vm1381_vm5 = vcmask 785408  }
   0x3   :  { %v39_v4 = vld [vmem:[%s2280_s0] sm:$0xff]  ;;  %1505 = vmatpush3.bf16.msra.mxu0 %v72_v2  ;;  %1515 = vmatpush3.bf16.msra.mxu1 %v1866_v3  ;;  %v48_v9 = vpack.c.bf16 %v42_v8, %v41_v7  ;;  %v44_v34 = vld [vmem:[%s2280_s0 + $0x28] sm:$0xff]  ;;  %v45_v35 = vld [vmem:[%s2280_s0 + $0x30] sm:$0xff] }
   0x4   :  { %v47_v6 = vpack.c.bf16 %v40_v5, %v39_v4  ;;  %1522 = vmatprep.subr.bf16.mxu0 %v1816_v1  ;;  %1516 = vmatprep.subr.bf16.mxu1 %v1816_v1  ;;  %v1897_v12 = vld [vmem:[%s2281_s3] ss:$0 sm:$0xff]  ;;  %v1928_v38 = vld [vmem:[%s2282_s4 + $0x8] sm:$0xff]   ;;  %v46_v39 = vld [vmem:[%s2280_s0 + $0x38] sm:$0xff] }
   0x5   :  { %v43_v33 = vld [vmem:[%s2280_s0 + $0x20] sm:$0xff]  ;;  %v50_v40 = vpack.c.bf16 %v46_v39, %v45_v35  ;;  %v1943_v41 = vld [vmem:[%s2282_s4 + $0x10] sm:$0xff]   ;;  %v1955_v43 = vld [vmem:[%s2282_s4 + $0x18] sm:$0xff]  }
   0x6   :  { %1506 = vmatprep.mubr.msk.bf16.mxu0 %vm57_vm2, %v47_v6  ;;  %v1923_v36 = vld [vmem:[%s2282_s4] sm:$0xff]   ;;  %v49_v37 = vpack.c.bf16 %v44_v34, %v43_v33 }
   0x7   :  { %1507 = vmatmul.mubr.msk.bf16.vlgmr.msra.gmra.mrb[0].mxu0 %vm57_vm2, %v48_v9  ;;  %1517 = vmatpush3.bf16.msra.mxu1 %v1884_v10  ;;  %v1992_v55 = vld [vmem:[%s2283_s5] ss:$0 sm:$0xff] }
   0x8   :  { %1542 = vmatprep.subr.bf16.mxu1 %v1816_v1  ;;  %1523 = vmatpush3.bf16.msra.mxu0 %v1923_v36 }
   0x9   :  { %1510 = vmatprep.mubr.msk.bf16.mxu0 %vm57_vm2, %v49_v37  ;;  %1524 = vmatprep.subr.bf16.mxu0 %v1816_v1 }
   0xa   :  { %1519 = vmatmul.mubr.bf16.vlgmr.msra.gmra.mrb[0].mxu1 %v1818_v11 }
   0xb   :  { %1550 = vmatprep.mubr.msk.bf16.mxu1 %vm1817_vm1, %v1816_v1  ;;  %1543 = vmatpush3.bf16.msra.mxu1 %v1923_v36 }
   0xc   :  { %1544 = vmatprep.subr.bf16.mxu1 %v1816_v1  ;;  %1525 = vmatpush3.bf16.msra.mxu0 %v1928_v38 }
   0xd   :  { %1526 = vmatprep.subr.bf16.mxu0 %v1816_v1 }
   0xf   :  { %1511 = vmatmul.mubr.msk.bf16.gmra.mrb[4].mxu0 %vm57_vm2, %v50_v40  ;;  %1545 = vmatpush3.bf16.msra.mxu1 %v1928_v38 }
  0x10   :  { %1530 = vmatprep.mubr.msk.bf16.mxu0 %vm1817_vm1, %v1816_v1  ;;  %1546 = vmatprep.subr.bf16.mxu1 %v1816_v1 }
  0x11   :  { %1527 = vmatpush3.bf16.msra.mxu0 %v1943_v41 }
  0x12   :  { %1528 = vmatprep.subr.bf16.mxu0 %v1816_v1 }
  0x13   :  { %1547 = vmatpush3.bf16.msra.mxu1 %v1943_v41 }
  0x14   :  { %1548 = vmatprep.subr.bf16.mxu1 %v1816_v1 }
  0x15   :  { %1529 = vmatpush3.bf16.msra.mxu0 %v1955_v43 }
  0x16   :  { %1534 = vmatprep.subr.bf16.mxu0 %v1816_v1 }
  0x17   :  { %1549 = vmatpush3.bf16.msra.mxu1 %v1955_v43 }
  0x18   :  { %1574 = vmatprep.subr.bf16.mxu1 %v1816_v1 }
  0xda   :  { %v1899_v13 = vpop.f32.mrb[0].mxu0 }
  0xdb   :  { %v108_v14 = vpop.f32.mrb[1].mxu0 }
  0xdc   :  { %v109_v15 = vadd.f32 %v1897_v12, %v108_v14  ;;  %v1902_v16 = vpop.f32.mrb[2].mxu0 }
  0xdd   :  { %v1904_v17 = vpop.f32.mrb[3].mxu0  ;;  %v189_v18 = vpop.f32.mrb[0].mxu1 }
  0xde   :  { %v195_v19 = vadd.f32 %v189_v18, %v109_v15  ;;  %v1520_v20 = vpop.f32.mrb[1].mxu1  ;;  %v112_v61 = vadd.f32 %v1897_v12, %v1904_v17 }
  0xdf   :  { %v192_v21 = vpop.f32.mrb[2].mxu1 }
  0xe0   :  { %1687 = vtanh.f32 %v195_v19  ;;  %v1521_v22 = vpop.f32.mrb[3].mxu1  ;;  %v1399_v24 = vmul.f32 -1.442695, %v195_v19 }
  0xe2   :  { %1689 = vpow2.f32 %v1399_v24  ;;  %v1966_v47 = vpop.f32.mrb[4].mxu0 }
  0xe3   :  { %v1968_v48 = vpop.f32.mrb[5].mxu0 }
  0xe4   :  { %v1970_v49 = vpop.f32.mrb[6].mxu0 }
  0xe5   :  { %v1972_v50 = vpop.f32.mrb[7].mxu0 }
  0xea   :  { %v1688_v23 = vpop.eup %1687 }
  0xeb   :  { %205 = vrot.lane.b32.xlu0 %v1688_v23, %s1819_s11 }
  0xec   :  { %v1690_v25 = vpop.eup %1689 }
  0xed   :  { %v199_v26 = vadd.f32 1.0, %v1690_v25 }
  0xef   :  { %1691 = vrcp.f32 %v199_v26 }
  0xf9   :  { %v1692_v27 = vpop.eup %1691 }
  0xfa   :  { %v203_v30 = vmul.f32 0.0, %v1692_v27 }
 0x15d   :  { %v206_v28 = vpop.permute.xlu0 %205 }
 0x15e   :  { %v208_v29 = vmul.f32 %v1692_v27, %v206_v28 }
 0x160   :  { %210 = vrot.lane.b32.xlu0 %v208_v29, %s1820_s12 }
 0x1d2   :  { %v211_v31 = vpop.permute.xlu0 %210 }
 0x1d3   :  { %v1908_v32 = vadd.f32 %v211_v31, %v203_v30 }
 0x1d5   :  { %1693 = vtanh.f32 %v1908_v32 }
 0x1df   :  { %v1694_v42 = vpop.eup %1693 }
 0x1e0   :  { %216 = vrot.lane.b32.xlu1 %v1694_v42, %s1819_s11 }
 0x252   :  { %v217_v44 = vpop.permute.xlu1 %216 }
 0x253   :  { %v219_v45 = vmul.f32 %v1692_v27, %v217_v44 }
 0x255   :  { %v324_v46 = vpack.c.bf16 %v219_v45, %v219_v45  ;;  %221 = vrot.lane.b32.xlu1 %v219_v45, %s1820_s12  ;;  %v117_v45 = vadd.f32 %v1899_v13, %v1897_v12 }
 0x257   :  { %326 = vrot.lane.b32.xlu0 %v324_v46, %s1820_s12 }
 0x2c7   :  { %v222_v51 = vpop.permute.xlu1 %221 }
 0x2c8   :  { %v224_v52 = vsel %vm151_vm3, %v222_v51, 0.0 }
 0x2c9   :  { %v225_v53 = vpack.c.bf16 %v224_v52, %v224_v52  ;;  %v327_v54 = vpop.permute.xlu0 %326 }
 0x2cb   :  { %1531 = vmatmul.mubr.msk.bf16.vlgmr.msra.gmra.mrb[8].mxu0 %vm256_vm4, %v225_v53 }
 0x2cc   :  { %1535 = vmatpush3.bf16.msra.mxu0 %v1866_v3  ;;  %1538 = vmatprep.mubr.msk.bf16.mxu0 %vm1817_vm1, %v1816_v1 }
 0x2cd   :  { %1536 = vmatprep.subr.bf16.mxu0 %v1816_v1 }
 0x2d0   :  { %1537 = vmatpush3.bf16.msra.mxu0 %v1884_v10 }
 0x2d1   :  { %1554 = vmatprep.subr.bf16.mxu0 %v1816_v1 }
 0x2d3   :  { %1539 = vmatmul.mubr.msk.bf16.vlgmr.msra.gmra.mrb[12].mxu0 %vm151_vm3, %v327_v54 }
 0x2d4   :  { %1555 = vmatpush3.bf16.msra.mxu0 %v1866_v3  ;;  %1558 = vmatprep.mubr.msk.bf16.mxu0 %vm1817_vm1, %v1816_v1 }
 0x2d5   :  { %1556 = vmatprep.subr.bf16.mxu0 %v1816_v1 }
 0x2d8   :  { %1557 = vmatpush3.bf16.msra.mxu0 %v1884_v10 }
 0x2d9   :  { %1562 = vmatprep.subr.bf16.mxu0 %v1816_v1 }
 0x39e   :  { %v294_v56 = vpop.f32.mrb[8].mxu0 }
 0x39f   :  { %v295_v57 = vadd.f32 %v1992_v55, %v294_v56  ;;  %v1532_v58 = vpop.f32.mrb[9].mxu0 }
 0x3a0   :  { %v297_v59 = vpop.f32.mrb[10].mxu0 }
 0x3a1   :  { %1695 = vtanh.f32 %v295_v57  ;;  %v1533_v60 = vpop.f32.mrb[11].mxu0  ;;  %v1406_v7 = vmul.f32 -1.442695, %v295_v57 }
 0x3a6   :  { %v365_v62 = vpop.f32.mrb[12].mxu0 }
 0x3a7   :  { %v371_v63 = vadd.f32 %v365_v62, %v112_v61  ;;  %v1540_v0 = vpop.f32.mrb[13].mxu0 }
 0x3a8   :  { %v368_v2 = vpop.f32.mrb[14].mxu0 }
 0x3a9   :  { %1697 = vtanh.f32 %v371_v63  ;;  %v1541_v4 = vpop.f32.mrb[15].mxu0  ;;  %v1408_v8 = vmul.f32 -1.442695, %v371_v63 }
 0x3aa   :  { %1699 = vpow2.f32 %v1406_v7 }
 0x3ab   :  { %v1696_v5 = vpop.eup %1695  ;;  %1701 = vpow2.f32 %v1408_v8 }
 0x3ac   :  { %309 = vrot.lane.b32.xlu1 %v1696_v5, %s1819_s11 }
 0x3b3   :  { %v1698_v6 = vpop.eup %1697 }
 0x3b4   :  { %381 = vrot.lane.b32.xlu0 %v1698_v6, %s1819_s11  ;;  %v1700_v9 = vpop.eup %1699 }
 0x3b5   :  { %v303_v11 = vadd.f32 1.0, %v1700_v9  ;;  %v1702_v14 = vpop.eup %1701 }
 0x3b6   :  { %v375_v15 = vadd.f32 1.0, %v1702_v14 }
 0x3b7   :  { %1703 = vrcp.f32 %v303_v11 }
 0x3b8   :  { %1705 = vrcp.f32 %v375_v15 }
 0x3c1   :  { %v1704_v17 = vpop.eup %1703 }
 0x3c2   :  { %v1706_v20 = vpop.eup %1705  ;;  %v307_v23 = vmul.f32 0.0, %v1704_v17 }
 0x3c3   :  { %v379_v26 = vmul.f32 %v1706_v20, %v1908_v32 }
 0x41e   :  { %v310_v18 = vpop.permute.xlu1 %309 }
 0x41f   :  { %v312_v19 = vmul.f32 %v1704_v17, %v310_v18 }
 0x421   :  { %314 = vrot.lane.b32.xlu1 %v312_v19, %s1820_s12 }
 0x426   :  { %v382_v21 = vpop.permute.xlu0 %381 }
 0x427   :  { %v384_v22 = vmul.f32 %v1706_v20, %v382_v21 }
 0x429   :  { %386 = vrot.lane.b32.xlu0 %v384_v22, %s1820_s12 }
 0x493   :  { %v315_v24 = vpop.permute.xlu1 %314 }
 0x494   :  { %v2001_v25 = vadd.f32 %v315_v24, %v307_v23 }
 0x496   :  { %1707 = vtanh.f32 %v2001_v25 }
 0x49b   :  { %v387_v27 = vpop.permute.xlu0 %386 }
 0x49c   :  { %v2005_v28 = vadd.f32 %v387_v27, %v379_v26 }
 0x49e   :  { %1709 = vtanh.f32 %v2005_v28 }
 0x4a0   :  { %v1708_v29 = vpop.eup %1707 }
 0x4a1   :  { %320 = vrot.lane.b32.xlu1 %v1708_v29, %s1819_s11 }
 0x4a8   :  { %v1710_v30 = vpop.eup %1709 }
 0x4a9   :  { %392 = vrot.lane.b32.xlu0 %v1710_v30, %s1819_s11 }
 0x513   :  { %v321_v31 = vpop.permute.xlu1 %320 }
 0x514   :  { %v2010_v33 = vmul.f32 %v1704_v17, %v321_v31 }
 0x516   :  { %401 = vrot.lane.b32.xlu0 %v2010_v33, %s1819_s11 }
 0x51b   :  { %v393_v34 = vpop.permute.xlu0 %392 }
 0x51c   :  { %v395_v35 = vmul.f32 %v1706_v20, %v393_v34 }
 0x51e   :  { %397 = vrot.lane.b32.xlu1 %v395_v35, %s1820_s12  ;;  %v473_v32 = vpack.c.bf16 %v395_v35, %v395_v35 }
 0x522   :  { %475 = vrot.lane.b32.xlu1 %v473_v32, %s1820_s12  ;;  %v120_v32 = vadd.f32 %v1902_v16, %v1897_v12 }
 0x588   :  { %v402_v37 = vpop.permute.xlu0 %401 }
 0x590   :  { %v398_v39 = vpop.permute.xlu1 %397 }
 0x591   :  { %v404_v40 = vsel %vm151_vm3, %v398_v39, %v402_v37 }
 0x592   :  { %v405_v42 = vpack.c.bf16 %v404_v40, %v404_v40 }
 0x594   :  { %v476_v44 = vpop.permute.xlu1 %475  ;;  %1551 = vmatmul.mubr.msk.bf16.vlgmr.msra.gmra.mrb[4].mxu1 %vm256_vm4, %v405_v42 }
 0x595   :  { %1559 = vmatmul.mubr.msk.bf16.vlgmr.msra.gmra.mrb[16].mxu0 %vm151_vm3, %v476_v44  ;;  %1575 = vmatpush3.bf16.msra.mxu1 %v1866_v3 }
 0x596   :  { %1563 = vmatpush3.bf16.msra.mxu0 %v1923_v36  ;;  %1576 = vmatprep.subr.bf16.mxu1 %v1816_v1 }
 0x597   :  { %1564 = vmatprep.subr.bf16.mxu0 %v1816_v1  ;;  %1570 = vmatprep.mubr.msk.bf16.mxu0 %vm1817_vm1, %v1816_v1 }
 0x598   :  { %1578 = vmatprep.mubr.msk.bf16.mxu1 %vm1817_vm1, %v1816_v1 }
 0x599   :  { %1577 = vmatpush3.bf16.msra.mxu1 %v1884_v10 }
 0x59a   :  { %1565 = vmatpush3.bf16.msra.mxu0 %v1928_v38  ;;  %1582 = vmatprep.subr.bf16.mxu1 %v1816_v1 }
 0x59b   :  { %1566 = vmatprep.subr.bf16.mxu0 %v1816_v1 }
 0x59e   :  { %1567 = vmatpush3.bf16.msra.mxu0 %v1943_v41 }
 0x59f   :  { %1568 = vmatprep.subr.bf16.mxu0 %v1816_v1 }
 0x5a2   :  { %1569 = vmatpush3.bf16.msra.mxu0 %v1955_v43 }
 0x5a3   :  { %1594 = vmatprep.subr.bf16.mxu0 %v1816_v1 }
 0x667   :  { %v443_v46 = vpop.f32.mrb[4].mxu1 }
 0x668   :  { %v444_v51 = vadd.f32 %v1992_v55, %v443_v46  ;;  %v1552_v52 = vpop.f32.mrb[5].mxu1  ;;  %v514_v53 = vpop.f32.mrb[16].mxu0 }
 0x669   :  { %v520_v54 = vadd.f32 %v514_v53, %v117_v45  ;;  %v446_v56 = vpop.f32.mrb[6].mxu1  ;;  %v1560_v57 = vpop.f32.mrb[17].mxu0 }
 0x66a   :  { %1711 = vtanh.f32 %v444_v51  ;;  %v1553_v58 = vpop.f32.mrb[7].mxu1  ;;  %v517_v59 = vpop.f32.mrb[18].mxu0  ;;  %v1410_v13 = vmul.f32 -1.442695, %v444_v51 }
 0x66b   :  { %1713 = vtanh.f32 %v520_v54  ;;  %v1561_v60 = vpop.f32.mrb[19].mxu0  ;;  %v1412_v63 = vmul.f32 -1.442695, %v520_v54 }
 0x66c   :  { %1715 = vpow2.f32 %v1410_v13 }
 0x66d   :  { %1717 = vpow2.f32 %v1412_v63 }
 0x674   :  { %v1712_v61 = vpop.eup %1711 }
 0x675   :  { %v1714_v62 = vpop.eup %1713  ;;  %458 = vrot.lane.b32.xlu0 %v1712_v61, %s1819_s11 }
 0x676   :  { %530 = vrot.lane.b32.xlu1 %v1714_v62, %s1819_s11  ;;  %v1716_v0 = vpop.eup %1715 }
 0x677   :  { %v1718_v2 = vpop.eup %1717  ;;  %v452_v4 = vadd.f32 1.0, %v1716_v0 }
 0x678   :  { %v524_v5 = vadd.f32 1.0, %v1718_v2 }
 0x679   :  { %1719 = vrcp.f32 %v452_v4 }
 0x67a   :  { %1721 = vrcp.f32 %v524_v5 }
 0x683   :  { %v1720_v6 = vpop.eup %1719 }
 0x684   :  { %v1722_v8 = vpop.eup %1721  ;;  %v456_v15 = vmul.f32 %v1720_v6, %v2001_v25 }
 0x685   :  { %v528_v18 = vmul.f32 %v1722_v8, %v2005_v28 }
 0x6e7   :  { %v459_v7 = vpop.permute.xlu0 %458 }
 0x6e8   :  { %v461_v9 = vmul.f32 %v1720_v6, %v459_v7  ;;  %v531_v11 = vpop.permute.xlu1 %530 }
 0x6e9   :  { %v533_v14 = vmul.f32 %v1722_v8, %v531_v11 }
 0x6ea   :  { %463 = vrot.lane.b32.xlu0 %v461_v9, %s1820_s12 }
 0x6eb   :  { %535 = vrot.lane.b32.xlu1 %v533_v14, %s1820_s12 }
 0x75c   :  { %v464_v17 = vpop.permute.xlu0 %463 }
 0x75d   :  { %v2044_v19 = vadd.f32 %v464_v17, %v456_v15  ;;  %v536_v20 = vpop.permute.xlu1 %535 }
 0x75e   :  { %v2046_v21 = vadd.f32 %v536_v20, %v528_v18 }
 0x75f   :  { %1723 = vtanh.f32 %v2044_v19 }
 0x760   :  { %1725 = vtanh.f32 %v2046_v21 }
 0x769   :  { %v1724_v22 = vpop.eup %1723 }
 0x76a   :  { %v1726_v23 = vpop.eup %1725  ;;  %469 = vrot.lane.b32.xlu0 %v1724_v22, %s1819_s11 }
 0x76b   :  { %541 = vrot.lane.b32.xlu1 %v1726_v23, %s1819_s11 }
 0x7dc   :  { %v470_v24 = vpop.permute.xlu0 %469 }
 0x7dd   :  { %v472_v25 = vmul.f32 %v1720_v6, %v470_v24  ;;  %v542_v26 = vpop.permute.xlu1 %541 }
 0x7de   :  { %v544_v27 = vmul.f32 %v1722_v8, %v542_v26 }
 0x7df   :  { %550 = vrot.lane.b32.xlu1 %v472_v25, %s1819_s11 }
 0x7e0   :  { %546 = vrot.lane.b32.xlu0 %v544_v27, %s1820_s12  ;;  %v622_v28 = vpack.c.bf16 %v544_v27, %v544_v27  ;;  %v125_v27 = vadd.f32 %v1897_v12, %v1968_v48 }
 0x7e4   :  { %624 = vrot.lane.b32.xlu0 %v622_v28, %s1820_s12 }
 0x851   :  { %v2055_v29 = vpop.permute.xlu1 %550 }
 0x852   :  { %v547_v30 = vpop.permute.xlu0 %546 }
 0x853   :  { %v553_v31 = vsel %vm151_vm3, %v547_v30, %v2055_v29 }
 0x854   :  { %v554_v34 = vpack.c.bf16 %v553_v31, %v553_v31 }
 0x856   :  { %v625_v35 = vpop.permute.xlu0 %624  ;;  %1571 = vmatmul.mubr.msk.bf16.vlgmr.msra.gmra.mrb[20].mxu0 %vm256_vm4, %v554_v34 }
 0x857   :  { %1579 = vmatmul.mubr.msk.bf16.vlgmr.msra.gmra.mrb[8].mxu1 %vm151_vm3, %v625_v35  ;;  %1595 = vmatpush3.bf16.msra.mxu0 %v1866_v3 }
 0x858   :  { %1583 = vmatpush3.bf16.msra.mxu1 %v1923_v36  ;;  %1596 = vmatprep.subr.bf16.mxu0 %v1816_v1 }
 0x859   :  { %1584 = vmatprep.subr.bf16.mxu1 %v1816_v1  ;;  %1590 = vmatprep.mubr.msk.bf16.mxu1 %vm1817_vm1, %v1816_v1 }
 0x85a   :  { %1598 = vmatprep.mubr.msk.bf16.mxu0 %vm1817_vm1, %v1816_v1 }
 0x85b   :  { %1597 = vmatpush3.bf16.msra.mxu0 %v1884_v10 }
 0x85c   :  { %1585 = vmatpush3.bf16.msra.mxu1 %v1928_v38  ;;  %1602 = vmatprep.subr.bf16.mxu0 %v1816_v1 }
 0x85d   :  { %1586 = vmatprep.subr.bf16.mxu1 %v1816_v1 }
 0x860   :  { %1587 = vmatpush3.bf16.msra.mxu1 %v1943_v41 }
 0x861   :  { %1588 = vmatprep.subr.bf16.mxu1 %v1816_v1 }
 0x864   :  { %1589 = vmatpush3.bf16.msra.mxu1 %v1955_v43 }
 0x865   :  { %1614 = vmatprep.subr.bf16.mxu1 %v1816_v1 }
 0x929   :  { %v592_v37 = vpop.f32.mrb[20].mxu0 }
 0x92a   :  { %v593_v39 = vadd.f32 %v1992_v55, %v592_v37  ;;  %v1572_v40 = vpop.f32.mrb[21].mxu0  ;;  %v663_v42 = vpop.f32.mrb[8].mxu1 }
 0x92b   :  { %v669_v44 = vadd.f32 %v663_v42, %v120_v32  ;;  %v595_v45 = vpop.f32.mrb[22].mxu0  ;;  %v1580_v46 = vpop.f32.mrb[9].mxu1 }
 0x92c   :  { %1727 = vtanh.f32 %v593_v39  ;;  %v1573_v51 = vpop.f32.mrb[23].mxu0  ;;  %v666_v52 = vpop.f32.mrb[10].mxu1  ;;  %v1414_v16 = vmul.f32 -1.442695, %v593_v39 }
 0x92d   :  { %1729 = vtanh.f32 %v669_v44  ;;  %v1581_v53 = vpop.f32.mrb[11].mxu1  ;;  %v1416_v57 = vmul.f32 -1.442695, %v669_v44 }
 0x92e   :  { %1731 = vpow2.f32 %v1414_v16 }
 0x92f   :  { %1733 = vpow2.f32 %v1416_v57 }
 0x936   :  { %v1728_v54 = vpop.eup %1727 }
 0x937   :  { %v1730_v56 = vpop.eup %1729  ;;  %607 = vrot.lane.b32.xlu1 %v1728_v54, %s1819_s11 }
 0x938   :  { %679 = vrot.lane.b32.xlu0 %v1730_v56, %s1819_s11  ;;  %v1732_v58 = vpop.eup %1731 }
 0x939   :  { %v1734_v59 = vpop.eup %1733  ;;  %v601_v60 = vadd.f32 1.0, %v1732_v58 }
 0x93a   :  { %v673_v61 = vadd.f32 1.0, %v1734_v59 }
 0x93b   :  { %1735 = vrcp.f32 %v601_v60 }
 0x93c   :  { %1737 = vrcp.f32 %v673_v61 }
 0x945   :  { %v1736_v62 = vpop.eup %1735 }
 0x946   :  { %v1738_v63 = vpop.eup %1737  ;;  %v605_v5 = vmul.f32 %v1736_v62, %v2044_v19 }
 0x947   :  { %v677_v7 = vmul.f32 %v1738_v63, %v2046_v21 }
 0x9a9   :  { %v608_v13 = vpop.permute.xlu1 %607 }
 0x9aa   :  { %v610_v0 = vmul.f32 %v1736_v62, %v608_v13  ;;  %v680_v2 = vpop.permute.xlu0 %679 }
 0x9ab   :  { %v682_v4 = vmul.f32 %v1738_v63, %v680_v2 }
 0x9ac   :  { %612 = vrot.lane.b32.xlu1 %v610_v0, %s1820_s12 }
 0x9ad   :  { %684 = vrot.lane.b32.xlu0 %v682_v4, %s1820_s12 }
 0xa1e   :  { %v613_v6 = vpop.permute.xlu1 %612 }
 0xa1f   :  { %v2086_v8 = vadd.f32 %v613_v6, %v605_v5  ;;  %v685_v9 = vpop.permute.xlu0 %684 }
 0xa20   :  { %v2088_v11 = vadd.f32 %v685_v9, %v677_v7 }
 0xa21   :  { %1739 = vtanh.f32 %v2086_v8 }
 0xa22   :  { %1741 = vtanh.f32 %v2088_v11 }
 0xa2b   :  { %v1740_v14 = vpop.eup %1739 }
 0xa2c   :  { %v1742_v15 = vpop.eup %1741  ;;  %618 = vrot.lane.b32.xlu1 %v1740_v14, %s1819_s11 }
 0xa2d   :  { %690 = vrot.lane.b32.xlu0 %v1742_v15, %s1819_s11 }
 0xa9e   :  { %v619_v17 = vpop.permute.xlu1 %618 }
 0xa9f   :  { %v2094_v18 = vmul.f32 %v1736_v62, %v619_v17  ;;  %v691_v19 = vpop.permute.xlu0 %690 }
 0xaa0   :  { %v693_v20 = vmul.f32 %v1738_v63, %v691_v19 }
 0xaa1   :  { %699 = vrot.lane.b32.xlu0 %v2094_v18, %s1819_s11 }
 0xaa2   :  { %695 = vrot.lane.b32.xlu1 %v693_v20, %s1820_s12  ;;  %v771_v21 = vpack.c.bf16 %v693_v20, %v693_v20 }
 0xaa6   :  { %773 = vrot.lane.b32.xlu1 %v771_v21, %s1820_s12  ;;  %v128_v21 = vadd.f32 %v1897_v12, %v1972_v50 }
 0xb13   :  { %v700_v22 = vpop.permute.xlu0 %699 }
 0xb14   :  { %v696_v23 = vpop.permute.xlu1 %695 }
 0xb15   :  { %v702_v24 = vsel %vm151_vm3, %v696_v23, %v700_v22 }
 0xb16   :  { %v703_v25 = vpack.c.bf16 %v702_v24, %v702_v24 }
 0xb18   :  { %1591 = vmatmul.mubr.msk.bf16.vlgmr.msra.gmra.mrb[12].mxu1 %vm256_vm4, %v703_v25  ;;  %v774_v26 = vpop.permute.xlu1 %773 }
 0xb19   :  { %1599 = vmatmul.mubr.msk.bf16.vlgmr.msra.gmra.mrb[24].mxu0 %vm151_vm3, %v774_v26  ;;  %1615 = vmatpush3.bf16.msra.mxu1 %v1866_v3 }
 0xb1a   :  { %1603 = vmatpush3.bf16.msra.mxu0 %v1923_v36  ;;  %1616 = vmatprep.subr.bf16.mxu1 %v1816_v1 }
 0xb1b   :  { %1604 = vmatprep.subr.bf16.mxu0 %v1816_v1  ;;  %1610 = vmatprep.mubr.msk.bf16.mxu0 %vm1817_vm1, %v1816_v1 }
 0xb1c   :  { %1618 = vmatprep.mubr.msk.bf16.mxu1 %vm1817_vm1, %v1816_v1 }
 0xb1d   :  { %1617 = vmatpush3.bf16.msra.mxu1 %v1884_v10 }
 0xb1e   :  { %1605 = vmatpush3.bf16.msra.mxu0 %v1928_v38  ;;  %1622 = vmatprep.subr.bf16.mxu1 %v1816_v1 }
 0xb1f   :  { %1606 = vmatprep.subr.bf16.mxu0 %v1816_v1 }
 0xb22   :  { %1607 = vmatpush3.bf16.msra.mxu0 %v1943_v41 }
 0xb23   :  { %1608 = vmatprep.subr.bf16.mxu0 %v1816_v1 }
 0xb26   :  { %1609 = vmatpush3.bf16.msra.mxu0 %v1955_v43 }
 0xb27   :  { %1634 = vmatprep.subr.bf16.mxu0 %v1816_v1 }
 0xbeb   :  { %v741_v28 = vpop.f32.mrb[12].mxu1 }
 0xbec   :  { %v742_v30 = vadd.f32 %v1992_v55, %v741_v28  ;;  %v1592_v31 = vpop.f32.mrb[13].mxu1  ;;  %v812_v34 = vpop.f32.mrb[24].mxu0 }
 0xbed   :  { %v818_v35 = vadd.f32 %v812_v34, %v125_v27  ;;  %v744_v32 = vpop.f32.mrb[14].mxu1  ;;  %v1600_v37 = vpop.f32.mrb[25].mxu0 }
 0xbee   :  { %1743 = vtanh.f32 %v742_v30  ;;  %v1593_v39 = vpop.f32.mrb[15].mxu1  ;;  %v815_v40 = vpop.f32.mrb[26].mxu0  ;;  %v1418_v48 = vmul.f32 -1.442695, %v742_v30 }
 0xbef   :  { %1745 = vtanh.f32 %v818_v35  ;;  %v1601_v42 = vpop.f32.mrb[27].mxu0  ;;  %v1420_v46 = vmul.f32 -1.442695, %v818_v35 }
 0xbf0   :  { %1747 = vpow2.f32 %v1418_v48 }
 0xbf1   :  { %1749 = vpow2.f32 %v1420_v46 }
 0xbf8   :  { %v1744_v44 = vpop.eup %1743 }
 0xbf9   :  { %v1746_v45 = vpop.eup %1745  ;;  %756 = vrot.lane.b32.xlu0 %v1744_v44, %s1819_s11 }
 0xbfa   :  { %828 = vrot.lane.b32.xlu1 %v1746_v45, %s1819_s11  ;;  %v1748_v51 = vpop.eup %1747 }
 0xbfb   :  { %v1750_v52 = vpop.eup %1749  ;;  %v750_v53 = vadd.f32 1.0, %v1748_v51 }
 0xbfc   :  { %v822_v54 = vadd.f32 1.0, %v1750_v52 }
 0xbfd   :  { %1751 = vrcp.f32 %v750_v53 }
 0xbfe   :  { %1753 = vrcp.f32 %v822_v54 }
 0xc07   :  { %v1752_v56 = vpop.eup %1751 }
 0xc08   :  { %v1754_v57 = vpop.eup %1753  ;;  %v754_v61 = vmul.f32 %v1752_v56, %v2086_v8 }
 0xc09   :  { %v826_v13 = vmul.f32 %v1754_v57, %v2088_v11 }
 0xc6b   :  { %v757_v16 = vpop.permute.xlu0 %756 }
 0xc6c   :  { %v759_v58 = vmul.f32 %v1752_v56, %v757_v16  ;;  %v829_v59 = vpop.permute.xlu1 %828 }
 0xc6d   :  { %v831_v60 = vmul.f32 %v1754_v57, %v829_v59 }
 0xc6e   :  { %761 = vrot.lane.b32.xlu0 %v759_v58, %s1820_s12 }
 0xc6f   :  { %833 = vrot.lane.b32.xlu1 %v831_v60, %s1820_s12 }
 0xce0   :  { %v762_v62 = vpop.permute.xlu0 %761 }
 0xce1   :  { %v2128_v63 = vadd.f32 %v762_v62, %v754_v61  ;;  %v834_v0 = vpop.permute.xlu1 %833 }
 0xce2   :  { %v2130_v2 = vadd.f32 %v834_v0, %v826_v13 }
 0xce3   :  { %1755 = vtanh.f32 %v2128_v63 }
 0xce4   :  { %1757 = vtanh.f32 %v2130_v2 }
 0xced   :  { %v1756_v4 = vpop.eup %1755 }
 0xcee   :  { %v1758_v5 = vpop.eup %1757  ;;  %767 = vrot.lane.b32.xlu0 %v1756_v4, %s1819_s11 }
 0xcef   :  { %839 = vrot.lane.b32.xlu1 %v1758_v5, %s1819_s11 }
 0xd60   :  { %v768_v6 = vpop.permute.xlu0 %767 }
 0xd61   :  { %v2136_v7 = vmul.f32 %v1752_v56, %v768_v6  ;;  %v840_v8 = vpop.permute.xlu1 %839 }
 0xd62   :  { %v842_v9 = vmul.f32 %v1754_v57, %v840_v8 }
 0xd63   :  { %848 = vrot.lane.b32.xlu1 %v2136_v7, %s1819_s11 }
 0xd64   :  { %844 = vrot.lane.b32.xlu0 %v842_v9, %s1820_s12  ;;  %v920_v11 = vpack.c.bf16 %v842_v9, %v842_v9 }
 0xd68   :  { %922 = vrot.lane.b32.xlu0 %v920_v11, %s1820_s12 }
 0xdd5   :  { %v849_v14 = vpop.permute.xlu1 %848 }
 0xdd6   :  { %v845_v15 = vpop.permute.xlu0 %844 }
 0xdd7   :  { %v851_v17 = vsel %vm151_vm3, %v845_v15, %v849_v14 }
 0xdd8   :  { %v852_v19 = vpack.c.bf16 %v851_v17, %v851_v17 }
 0xdda   :  { %v923_v20 = vpop.permute.xlu0 %922  ;;  %1611 = vmatmul.mubr.msk.bf16.vlgmr.msra.gmra.mrb[28].mxu0 %vm256_vm4, %v852_v19 }
 0xddb   :  { %1619 = vmatmul.mubr.msk.bf16.vlgmr.msra.gmra.mrb[16].mxu1 %vm151_vm3, %v923_v20  ;;  %1635 = vmatpush3.bf16.msra.mxu0 %v1866_v3 }
 0xddc   :  { %1623 = vmatpush3.bf16.msra.mxu1 %v1923_v36  ;;  %1636 = vmatprep.subr.bf16.mxu0 %v1816_v1 }
 0xddd   :  { %1624 = vmatprep.subr.bf16.mxu1 %v1816_v1  ;;  %1630 = vmatprep.mubr.msk.bf16.mxu1 %vm1817_vm1, %v1816_v1 }
 0xdde   :  { %1638 = vmatprep.mubr.msk.bf16.mxu0 %vm1817_vm1, %v1816_v1 }
 0xddf   :  { %1637 = vmatpush3.bf16.msra.mxu0 %v1884_v10 }
 0xde0   :  { %1625 = vmatpush3.bf16.msra.mxu1 %v1928_v38  ;;  %1642 = vmatprep.subr.bf16.mxu0 %v1816_v1 }
 0xde1   :  { %1626 = vmatprep.subr.bf16.mxu1 %v1816_v1 }
 0xde4   :  { %1627 = vmatpush3.bf16.msra.mxu1 %v1943_v41 }
 0xde5   :  { %1628 = vmatprep.subr.bf16.mxu1 %v1816_v1 }
 0xde8   :  { %1629 = vmatpush3.bf16.msra.mxu1 %v1955_v43 }
 0xde9   :  { %1654 = vmatprep.subr.bf16.mxu1 %v1816_v1 }
 0xead   :  { %v890_v22 = vpop.f32.mrb[28].mxu0 }
 0xeae   :  { %v891_v23 = vadd.f32 %v1992_v55, %v890_v22  ;;  %v1612_v24 = vpop.f32.mrb[29].mxu0  ;;  %v961_v25 = vpop.f32.mrb[16].mxu1 }
 0xeaf   :  { %v967_v26 = vadd.f32 %v961_v25, %v128_v21  ;;  %v893_v27 = vpop.f32.mrb[30].mxu0  ;;  %v1620_v28 = vpop.f32.mrb[17].mxu1 }
 0xeb0   :  { %1759 = vtanh.f32 %v891_v23  ;;  %v1613_v30 = vpop.f32.mrb[31].mxu0  ;;  %v964_v31 = vpop.f32.mrb[18].mxu1  ;;  %v1422_v50 = vmul.f32 -1.442695, %v891_v23 }
 0xeb1   :  { %1761 = vtanh.f32 %v967_v26  ;;  %v1621_v34 = vpop.f32.mrb[19].mxu1  ;;  %v1424_v37 = vmul.f32 -1.442695, %v967_v26 }
 0xeb2   :  { %1763 = vpow2.f32 %v1422_v50 }
 0xeb3   :  { %1765 = vpow2.f32 %v1424_v37 }
 0xeba   :  { %v1760_v35 = vpop.eup %1759 }
 0xebb   :  { %v1762_v32 = vpop.eup %1761  ;;  %905 = vrot.lane.b32.xlu1 %v1760_v35, %s1819_s11 }
 0xebc   :  { %977 = vrot.lane.b32.xlu0 %v1762_v32, %s1819_s11  ;;  %v1764_v39 = vpop.eup %1763 }
 0xebd   :  { %v1766_v40 = vpop.eup %1765  ;;  %v899_v42 = vadd.f32 1.0, %v1764_v39 }
 0xebe   :  { %v971_v44 = vadd.f32 1.0, %v1766_v40 }
 0xebf   :  { %1767 = vrcp.f32 %v899_v42 }
 0xec0   :  { %1769 = vrcp.f32 %v971_v44 }
 0xec9   :  { %v1768_v45 = vpop.eup %1767 }
 0xeca   :  { %v1770_v46 = vpop.eup %1769  ;;  %v903_v54 = vmul.f32 %v1768_v45, %v2128_v63 }
 0xecb   :  { %v975_v16 = vmul.f32 %v1770_v46, %v2130_v2 }
 0xf2d   :  { %v906_v48 = vpop.permute.xlu1 %905 }
 0xf2e   :  { %v908_v51 = vmul.f32 %v1768_v45, %v906_v48  ;;  %v978_v52 = vpop.permute.xlu0 %977 }
 0xf2f   :  { %v980_v53 = vmul.f32 %v1770_v46, %v978_v52 }
 0xf30   :  { %910 = vrot.lane.b32.xlu1 %v908_v51, %s1820_s12 }
 0xf31   :  { %982 = vrot.lane.b32.xlu0 %v980_v53, %s1820_s12 }
 0xfa2   :  { %v911_v56 = vpop.permute.xlu1 %910 }
 0xfa3   :  { %v2170_v57 = vadd.f32 %v911_v56, %v903_v54  ;;  %v983_v58 = vpop.permute.xlu0 %982 }
 0xfa4   :  { %v2172_v59 = vadd.f32 %v983_v58, %v975_v16 }
 0xfa5   :  { %1771 = vtanh.f32 %v2170_v57 }
 0xfa6   :  { %1773 = vtanh.f32 %v2172_v59 }
 0xfaf   :  { %v1772_v60 = vpop.eup %1771 }
 0xfb0   :  { %v1774_v61 = vpop.eup %1773  ;;  %916 = vrot.lane.b32.xlu1 %v1772_v60, %s1819_s11 }
 0xfb1   :  { %988 = vrot.lane.b32.xlu0 %v1774_v61, %s1819_s11 }
0x1022   :  { %v917_v62 = vpop.permute.xlu1 %916 }
0x1023   :  { %v2178_v13 = vmul.f32 %v1768_v45, %v917_v62  ;;  %v989_v63 = vpop.permute.xlu0 %988  ;;  %v1815_v62 = vld [vmem:[%s2281_s3] ss:$0 sm:$0xff]  ;;  %s1821_s3 = smov 96  }
0x1024   :  { %v991_v0 = vmul.f32 %v1770_v46, %v989_v63 }
0x1025   :  { %997 = vrot.lane.b32.xlu0 %v2178_v13, %s1819_s11 }
0x1026   :  { %993 = vrot.lane.b32.xlu1 %v991_v0, %s1820_s12  ;;  %v1069_v2 = vpack.c.bf16 %v991_v0, %v991_v0 }
0x102a   :  { %1071 = vrot.lane.b32.xlu1 %v1069_v2, %s1820_s12 }
0x1097   :  { %v998_v4 = vpop.permute.xlu0 %997 }
0x1098   :  { %v994_v5 = vpop.permute.xlu1 %993 }
0x1099   :  { %v1000_v6 = vsel %vm151_vm3, %v994_v5, %v998_v4 }
0x109a   :  { %v1001_v8 = vpack.c.bf16 %v1000_v6, %v1000_v6 }
0x109c   :  { %1631 = vmatmul.mubr.msk.bf16.vlgmr.msra.gmra.mrb[20].mxu1 %vm256_vm4, %v1001_v8  ;;  %v1072_v9 = vpop.permute.xlu1 %1071 }
0x109d   :  { %1639 = vmatmul.mubr.msk.bf16.vlgmr.msra.gmra.mrb[32].mxu0 %vm151_vm3, %v1072_v9  ;;  %1655 = vmatpush3.bf16.msra.mxu1 %v1866_v3  ;;  %v133_v3 = vadd.f32 %v1966_v47, %v1897_v12 }
0x109e   :  { %1643 = vmatpush3.bf16.msra.mxu0 %v1923_v36  ;;  %1656 = vmatprep.subr.bf16.mxu1 %v1816_v1 }
0x109f   :  { %1644 = vmatprep.subr.bf16.mxu0 %v1816_v1  ;;  %1650 = vmatprep.mubr.msk.bf16.mxu0 %vm1817_vm1, %v1816_v1 }
0x10a0   :  { %1658 = vmatprep.mubr.msk.bf16.mxu1 %vm1817_vm1, %v1816_v1 }
0x10a1   :  { %1657 = vmatpush3.bf16.msra.mxu1 %v1884_v10 }
0x10a2   :  { %1645 = vmatpush3.bf16.msra.mxu0 %v1928_v38  ;;  %1662 = vmatprep.subr.bf16.mxu1 %v1816_v1 }
0x10a3   :  { %1646 = vmatprep.subr.bf16.mxu0 %v1816_v1 }
0x10a6   :  { %1647 = vmatpush3.bf16.msra.mxu0 %v1943_v41 }
0x10a7   :  { %1648 = vmatprep.subr.bf16.mxu0 %v1816_v1 }
0x10aa   :  { %1649 = vmatpush3.bf16.msra.mxu0 %v1955_v43 }
0x116f   :  { %v1039_v11 = vpop.f32.mrb[20].mxu1 }
0x1170   :  { %v1040_v14 = vadd.f32 %v1992_v55, %v1039_v11  ;;  %v1632_v15 = vpop.f32.mrb[21].mxu1  ;;  %v1110_v10 = vpop.f32.mrb[32].mxu0 }
0x1171   :  { %v1116_v17 = vadd.f32 %v1110_v10, %v133_v3  ;;  %v1042_v19 = vpop.f32.mrb[22].mxu1  ;;  %v1640_v20 = vpop.f32.mrb[33].mxu0 }
0x1172   :  { %1775 = vtanh.f32 %v1040_v14  ;;  %v1633_v21 = vpop.f32.mrb[23].mxu1  ;;  %v1113_v22 = vpop.f32.mrb[34].mxu0  ;;  %v1426_v12 = vmul.f32 -1.442695, %v1040_v14 }
0x1173   :  { %1777 = vtanh.f32 %v1116_v17  ;;  %v1641_v23 = vpop.f32.mrb[35].mxu0  ;;  %v1428_v47 = vmul.f32 -1.442695, %v1116_v17 }
0x1174   :  { %1779 = vpow2.f32 %v1426_v12 }
0x1175   :  { %1781 = vpow2.f32 %v1428_v47 }
0x117c   :  { %v1776_v24 = vpop.eup %1775 }
0x117d   :  { %v1778_v25 = vpop.eup %1777  ;;  %1054 = vrot.lane.b32.xlu0 %v1776_v24, %s1819_s11 }
0x117e   :  { %1126 = vrot.lane.b32.xlu1 %v1778_v25, %s1819_s11  ;;  %v1780_v26 = vpop.eup %1779 }
0x117f   :  { %v1782_v27 = vpop.eup %1781  ;;  %v1048_v28 = vadd.f32 1.0, %v1780_v26 }
0x1180   :  { %v1120_v30 = vadd.f32 1.0, %v1782_v27 }
0x1181   :  { %1783 = vrcp.f32 %v1048_v28 }
0x1182   :  { %1785 = vrcp.f32 %v1120_v30 }
0x118b   :  { %v1784_v31 = vpop.eup %1783 }
0x118c   :  { %v1786_v35 = vpop.eup %1785  ;;  %v1052_v39 = vmul.f32 %v1784_v31, %v2170_v57 }
0x118d   :  { %v1124_v42 = vmul.f32 %v1786_v35, %v2172_v59 }
0x11ef   :  { %v1055_v34 = vpop.permute.xlu0 %1054 }
0x11f0   :  { %v1057_v32 = vmul.f32 %v1784_v31, %v1055_v34  ;;  %v1127_v50 = vpop.permute.xlu1 %1126 }
0x11f1   :  { %v1129_v37 = vmul.f32 %v1786_v35, %v1127_v50 }
0x11f2   :  { %1059 = vrot.lane.b32.xlu0 %v1057_v32, %s1820_s12 }
0x11f3   :  { %1131 = vrot.lane.b32.xlu1 %v1129_v37, %s1820_s12 }
0x1264   :  { %v1060_v40 = vpop.permute.xlu0 %1059 }
0x1265   :  { %v2211_v44 = vadd.f32 %v1060_v40, %v1052_v39  ;;  %v1132_v45 = vpop.permute.xlu1 %1131 }
0x1266   :  { %v2213_v48 = vadd.f32 %v1132_v45, %v1124_v42 }
0x1267   :  { %1787 = vtanh.f32 %v2211_v44 }
0x1268   :  { %1789 = vtanh.f32 %v2213_v48 }
0x1271   :  { %v1788_v46 = vpop.eup %1787 }
0x1272   :  { %v1790_v51 = vpop.eup %1789  ;;  %1065 = vrot.lane.b32.xlu0 %v1788_v46, %s1819_s11 }
0x1273   :  { %1137 = vrot.lane.b32.xlu1 %v1790_v51, %s1819_s11 }
0x12e4   :  { %v1066_v52 = vpop.permute.xlu0 %1065 }
0x12e5   :  { %v1068_v53 = vmul.f32 %v1784_v31, %v1066_v52  ;;  %v1138_v54 = vpop.permute.xlu1 %1137 }
0x12e6   :  { %v1140_v56 = vmul.f32 %v1786_v35, %v1138_v54 }
0x12e7   :  { %1146 = vrot.lane.b32.xlu1 %v1068_v53, %s1819_s11 }
0x12e8   :  { %1142 = vrot.lane.b32.xlu0 %v1140_v56, %s1820_s12  ;;  %v1218_v16 = vpack.c.bf16 %v1140_v56, %v1140_v56 }
0x12ec   :  { %1220 = vrot.lane.b32.xlu0 %v1218_v16, %s1820_s12 }
0x1359   :  { %v2222_v57 = vpop.permute.xlu1 %1146 }
0x135a   :  { %v1143_v58 = vpop.permute.xlu0 %1142 }
0x135b   :  { %v1149_v59 = vsel %vm151_vm3, %v1143_v58, %v2222_v57 }
0x135c   :  { %v1150_v60 = vpack.c.bf16 %v1149_v59, %v1149_v59 }
0x135e   :  { %v1221_v61 = vpop.permute.xlu0 %1220  ;;  %1651 = vmatmul.mubr.msk.bf16.vlgmr.msra.gmra.mrb[36].mxu0 %vm256_vm4, %v1150_v60 }
0x135f   :  { %1659 = vmatmul.mubr.msk.bf16.vlgmr.msra.gmra.mrb[24].mxu1 %vm151_vm3, %v1221_v61 }
0x1360   :  { %1663 = vmatpush3.bf16.msra.mxu1 %v1923_v36  ;;  %1670 = vmatprep.mubr.msk.bf16.mxu1 %vm1817_vm1, %v1816_v1  ;;  %v136_v36 = vadd.f32 %v1815_v62, %v1970_v49 }
0x1361   :  { %1664 = vmatprep.subr.bf16.mxu1 %v1816_v1 }
0x1364   :  { %1665 = vmatpush3.bf16.msra.mxu1 %v1928_v38 }
0x1365   :  { %1666 = vmatprep.subr.bf16.mxu1 %v1816_v1 }
0x1368   :  { %1667 = vmatpush3.bf16.msra.mxu1 %v1943_v41 }
0x1369   :  { %1668 = vmatprep.subr.bf16.mxu1 %v1816_v1 }
0x136c   :  { %1669 = vmatpush3.bf16.msra.mxu1 %v1955_v43 }
0x1431   :  { %v1188_v63 = vpop.f32.mrb[36].mxu0 }
0x1432   :  { %v1189_v0 = vadd.f32 %v1992_v55, %v1188_v63  ;;  %v1652_v2 = vpop.f32.mrb[37].mxu0  ;;  %v1259_v4 = vpop.f32.mrb[24].mxu1 }
0x1433   :  { %v1265_v38 = vadd.f32 %v1259_v4, %v136_v36  ;;  %v1191_v5 = vpop.f32.mrb[38].mxu0  ;;  %v1660_v6 = vpop.f32.mrb[25].mxu1 }
0x1434   :  { %1791 = vtanh.f32 %v1189_v0  ;;  %v1653_v41 = vpop.f32.mrb[39].mxu0  ;;  %v1262_v8 = vpop.f32.mrb[26].mxu1  ;;  %v1430_v49 = vmul.f32 -1.442695, %v1189_v0 }
0x1435   :  { %1793 = vtanh.f32 %v1265_v38  ;;  %v1661_v1 = vpop.f32.mrb[27].mxu1  ;;  %v1432_v3 = vmul.f32 -1.442695, %v1265_v38 }
0x1436   :  { %1795 = vpow2.f32 %v1430_v49 }
0x1437   :  { %1797 = vpow2.f32 %v1432_v3 }
0x143e   :  { %v1792_v43 = vpop.eup %1791 }
0x143f   :  { %v1794_v9 = vpop.eup %1793  ;;  %1203 = vrot.lane.b32.xlu1 %v1792_v43, %s1819_s11 }
0x1440   :  { %1275 = vrot.lane.b32.xlu0 %v1794_v9, %s1819_s11  ;;  %v1796_v11 = vpop.eup %1795 }
0x1441   :  { %v1798_v14 = vpop.eup %1797  ;;  %v1197_v15 = vadd.f32 1.0, %v1796_v11 }
0x1442   :  { %v1269_v10 = vadd.f32 1.0, %v1798_v14 }
0x1443   :  { %1799 = vrcp.f32 %v1197_v15 }
0x1444   :  { %1801 = vrcp.f32 %v1269_v10 }
0x144d   :  { %v1800_v17 = vpop.eup %1799 }
0x144e   :  { %v1802_v20 = vpop.eup %1801  ;;  %v1201_v24 = vmul.f32 %v1800_v17, %v2211_v44 }
0x144f   :  { %v1273_v12 = vmul.f32 %v1802_v20, %v2213_v48 }
0x14b1   :  { %v1204_v19 = vpop.permute.xlu1 %1203 }
0x14b2   :  { %v1206_v21 = vmul.f32 %v1800_v17, %v1204_v19  ;;  %v1276_v22 = vpop.permute.xlu0 %1275 }
0x14b3   :  { %v1278_v23 = vmul.f32 %v1802_v20, %v1276_v22 }
0x14b4   :  { %1208 = vrot.lane.b32.xlu1 %v1206_v21, %s1820_s12 }
0x14b5   :  { %1280 = vrot.lane.b32.xlu0 %v1278_v23, %s1820_s12 }
0x1526   :  { %v1209_v25 = vpop.permute.xlu1 %1208 }
0x1527   :  { %v1211_v47 = vadd.f32 %v1209_v25, %v1201_v24  ;;  %v1281_v26 = vpop.permute.xlu0 %1280 }
0x1528   :  { %v1283_v27 = vadd.f32 %v1281_v26, %v1273_v12 }
0x1529   :  { %1803 = vtanh.f32 %v1211_v47 }
0x152a   :  { %1805 = vtanh.f32 %v1283_v27 }
0x1533   :  { %v1804_v28 = vpop.eup %1803 }
0x1534   :  { %v1806_v30 = vpop.eup %1805  ;;  %1214 = vrot.lane.b32.xlu1 %v1804_v28, %s1819_s11 }
0x1535   :  { %1286 = vrot.lane.b32.xlu0 %v1806_v30, %s1819_s11 }
0x15a6   :  { %v1215_v31 = vpop.permute.xlu1 %1214 }
0x15a7   :  { %v1217_v34 = vmul.f32 %v1800_v17, %v1215_v31  ;;  %v1287_v35 = vpop.permute.xlu0 %1286 }
0x15a8   :  { %v1289_v32 = vmul.f32 %v1802_v20, %v1287_v35 }
0x15a9   :  { %1295 = vrot.lane.b32.xlu0 %v1217_v34, %s1819_s11 }
0x15aa   :  { %1291 = vrot.lane.b32.xlu1 %v1289_v32, %s1820_s12 }
0x161b   :  { %v1296_v50 = vpop.permute.xlu0 %1295 }
0x161c   :  { %v1292_v37 = vpop.permute.xlu1 %1291 }
0x161d   :  { %v1298_v39 = vsel %vm151_vm3, %v1292_v37, %v1296_v50 }
0x161e   :  { %v1299_v40 = vpack.c.bf16 %v1298_v39, %v1298_v39 }
0x1620   :  { %1671 = vmatmul.mubr.msk.bf16.vlgmr.msra.gmra.mrb[28].mxu1 %vm256_vm4, %v1299_v40 }
0x16f3   :  { %v1337_v42 = vpop.f32.mrb[28].mxu1 }
0x16f4   :  { %v1338_v44 = vadd.f32 %v1992_v55, %v1337_v42  ;;  %v1672_v45 = vpop.f32.mrb[29].mxu1 }
0x16f5   :  { %v1340_v48 = vpop.f32.mrb[30].mxu1 }
0x16f6   :  { %1807 = vtanh.f32 %v1338_v44  ;;  %v1673_v46 = vpop.f32.mrb[31].mxu1  ;;  %v1434_v52 = vmul.f32 -1.442695, %v1338_v44 }
0x16f8   :  { %1809 = vpow2.f32 %v1434_v52 }
0x1700   :  { %v1808_v51 = vpop.eup %1807 }
0x1701   :  { %1352 = vrot.lane.b32.xlu1 %v1808_v51, %s1819_s11 }
0x1702   :  { %v1810_v53 = vpop.eup %1809 }
0x1703   :  { %v1346_v54 = vadd.f32 1.0, %v1810_v53 }
0x1705   :  { %1373 = vrot.lane.b32.xlu1 %v2178_v13, %s1820_s12  ;;  %1811 = vrcp.f32 %v1346_v54 }
0x170f   :  { %v1812_v56 = vpop.eup %1811 }
0x1710   :  { %v1350_v55 = vmul.f32 %v1812_v56, %v1211_v47 }
0x1773   :  { %v1353_v16 = vpop.permute.xlu1 %1352 }
0x1774   :  { %v1355_v58 = vmul.f32 %v1812_v56, %v1353_v16 }
0x1776   :  { %1357 = vrot.lane.b32.xlu0 %v1355_v58, %s1820_s12 }
0x177a   :  { %1367 = vrot.lane.b32.xlu0 %v2010_v33, %s1820_s12 }
0x177e   :  { %1370 = vrot.lane.b32.xlu0 %v2094_v18, %s1821_s3  ;;  %v1374_v18 = vpop.permute.xlu1 %1373 }
0x177f   :  { %v1383_v2 = vsel %vm151_vm3, %v1374_v18, %v2222_v57 }
0x17e8   :  { %v1358_v59 = vpop.permute.xlu0 %1357 }
0x17e9   :  { %v1360_v60 = vadd.f32 %v1358_v59, %v1350_v55 }
0x17eb   :  { %1813 = vtanh.f32 %v1360_v60 }
0x17ec   :  { %v1368_v13 = vpop.permute.xlu0 %1367 }
0x17ed   :  { %v1379_v61 = vsel %vm151_vm3, %v1368_v13, %v2055_v29 }
0x17f0   :  { %v1371_v62 = vpop.permute.xlu0 %1370 }
0x17f1   :  { %v1380_v36 = vsel %vm256_vm4, %v1379_v61, %v1371_v62 }
0x17f2   :  { %v1382_v63 = vsel %vm1381_vm5, %v1380_v36, %v2136_v7 }
0x17f3   :  { %1386 = vst [vmem:[%s2284_s6] sm:$0xff] %v1382_v63 }
0x17f5   :  { %v1814_v33 = vpop.eup %1813 }
0x17f6   :  { %1363 = vrot.lane.b32.xlu1 %v1814_v33, %s1819_s11 }
0x17fa   :  { %1376 = vrot.lane.b32.xlu1 %v1217_v34, %s1821_s3 }
0x1868   :  { %v1364_v0 = vpop.permute.xlu1 %1363 }
0x1869   :  { %v1366_v29 = vmul.f32 %v1812_v56, %v1364_v0 }
0x186c   :  { %v1377_v4 = vpop.permute.xlu1 %1376 }
0x186d   :  { %v1384_v38 = vsel %vm256_vm4, %v1383_v2, %v1377_v4 }
0x186e   :  { %v1385_v5 = vsel %vm1381_vm5, %v1384_v38, %v1366_v29 }
0x186f   :  { %1387 = vst [vmem:[%s2284_s6 + $0x8] sm:$0xff] %v1385_v5 }

</bundles_post_ra>
